<compile_context>
chip_gen: v5e
topology: v5e:2x2
jax: 0.10.0
libtpu: 0.0.40
codegen_flags: <defaults>
</compile_context>

<pallas_src>
import jax
import jax.numpy as jnp
from jax.experimental import pallas as pl
from jax.experimental.pallas import tpu as pltpu

INPUT_DIM = 64
OUTPUT_DIM = 10
HIDDEN = (256, 256, 128, 64, 32)


def mlp_kernel(x_ref,
               w1_ref, b1_ref, w2_ref, b2_ref, w3_ref, b3_ref,
               w4_ref, b4_ref, w5_ref, b5_ref, w6_ref, b6_ref,
               o_ref):
    def linear(h, w_ref, b_ref, relu):
        # bf16 matmul inputs -> MXU, f32 accumulation; bias add / ReLU kept in f32 (VPU).
        y = jnp.dot(h.astype(jnp.bfloat16), w_ref[...],
                    preferred_element_type=jnp.float32) + b_ref[...]
        return jnp.maximum(y, 0.0) if relu else y

    h = x_ref[...]                           # f32 [tm, 64]; bf16 cast happens in linear()
    h = linear(h, w1_ref, b1_ref, True)      # relu(layer1); dropout = identity (eval)
    h = linear(h, w2_ref, b2_ref, True)      # relu(layer2); dropout = identity (eval)
    h = linear(h, w3_ref, b3_ref, True)      # relu(layer3); dropout = identity (eval)
    h = linear(h, w4_ref, b4_ref, True)      # relu(layer4); dropout = identity (eval)
    h = linear(h, w5_ref, b5_ref, True)      # relu(layer5)
    # final layer: no ReLU; out-features zero-padded to 128 lanes -> dense bf16 store
    o_ref[...] = linear(h, w6_ref, b6_ref, False).astype(o_ref.dtype)


def _round_up(n, m):
    return ((n + m - 1) // m) * m


def prepare_params(params):
    """Zero-pad narrow out-feature dims up to 128 lanes and cast weights to bf16.

    Zero padding is exact: padded activation columns are relu(0 + 0) = 0 and padded weight
    rows/columns are 0, so they contribute nothing to the real outputs.
    """
    prepared = []
    in_p = params[0][0].shape[0]             # in-dim of layer 1 (64, unpadded; matches x)
    for (w, b) in params:
        fin, fout = w.shape
        fout_p = _round_up(fout, 128)
        w_p = jnp.zeros((in_p, fout_p), jnp.float32).at[:fin, :fout].set(w)
        b_p = jnp.zeros((1, fout_p), jnp.float32).at[:, :fout].set(b)
        prepared.append((w_p.astype(jnp.bfloat16), b_p))
        in_p = fout_p
    return prepared


def _pick_tile(B, tm, min_grid=4):
    """Pick a batch tile: as large as requested, but small enough that the grid has
    >= min_grid steps (so v7x's 2 TCs both run and each gets pipelined steps), and never
    below 128 rows unless the batch itself is tiny."""
    Bp8 = _round_up(B, 8)
    tm_eff = min(tm, Bp8)
    tm_eff = max(8, (tm_eff // 8) * 8)
    while tm_eff >= 256 and pl.cdiv(Bp8, tm_eff) < min_grid:
        tm_eff //= 2
    return tm_eff


def feedforward_nn(x, params, *, tm=512):
    """x: [B, INPUT_DIM] float32. params: list of (W [in,out], b [1,out]) f32 pairs.

    Returns [B, OUTPUT_DIM] bfloat16 logits.
    tm: max rows per grid step (sweep 256/512/1024); clamped down so the grid has >=4
    steps when the batch allows (pipelining + v7x megacore sharding).
    """
    B, D = x.shape
    assert D == INPUT_DIM and tm % 8 == 0

    padded = prepare_params(params)
    out_pad = padded[-1][0].shape[1]         # 128: lane-dense output width

    tm_eff = _pick_tile(B, tm)
    Bp = _round_up(B, tm_eff)
    if Bp != B:
        x = jnp.pad(x, ((0, Bp - B), (0, 0)))   # only pass over x if padding is needed

    # x / out tiled over batch; weights & biases are grid-invariant full blocks
    # (constant (0, 0) index_map), so the pipeliner keeps them resident and does not
    # re-DMA them across grid steps.
    in_specs = [pl.BlockSpec((tm_eff, INPUT_DIM), lambda i: (i, 0))]
    flat_params = []
    for (w, b) in padded:
        in_specs.append(pl.BlockSpec(w.shape, lambda i: (0, 0)))
        in_specs.append(pl.BlockSpec(b.shape, lambda i: (0, 0)))
        flat_params.extend([w, b])

    flops = 2 * Bp * sum(int(w.shape[0]) * int(w.shape[1]) for (w, _) in padded)
    bytes_accessed = (Bp * INPUT_DIM * 4                                   # x (f32 in)
                      + sum(int(w.size) * 2 + int(b.size) * 4 for (w, b) in padded)
                      + Bp * out_pad * 2)                                  # out (bf16)

    out = pl.pallas_call(
        mlp_kernel,
        out_shape=jax.ShapeDtypeStruct((Bp, out_pad), jnp.bfloat16),
        grid_spec=pltpu.PrefetchScalarGridSpec(
            num_scalar_prefetch=0,
            grid=(Bp // tm_eff,),
            in_specs=in_specs,
            out_specs=pl.BlockSpec((tm_eff, out_pad), lambda i: (i, 0)),
        ),
        compiler_params=pltpu.CompilerParams(
            dimension_semantics=("parallel",)),   # batch axis shards across v7x's 2 TCs
        cost_estimate=pl.CostEstimate(flops=flops, transcendentals=0,
                                      bytes_accessed=bytes_accessed),
    )(x, *flat_params)

    return out[:B, :OUTPUT_DIM]


def init_params(key):
    """Deterministic init mimicking nn.Linear (uniform(-1/sqrt(fan_in), 1/sqrt(fan_in)))."""
    dims = (INPUT_DIM,) + HIDDEN + (OUTPUT_DIM,)
    params = []
    for fan_in, fan_out in zip(dims[:-1], dims[1:]):
        key, kw, kb = jax.random.split(key, 3)
        bound = 1.0 / (fan_in ** 0.5)
        w = jax.random.uniform(kw, (fan_in, fan_out), jnp.float32, -bound, bound)
        b = jax.random.uniform(kb, (1, fan_out), jnp.float32, -bound, bound)
        params.append((w, b))
    return params


def reference_kernel_numerics(x, params):
    """Pure-JAX reference mirroring the kernel exactly: bf16 matmul inputs, f32 accum,
    f32 bias/ReLU, final bf16 output cast."""
    h = x
    for i, (w, b) in enumerate(params):
        h = jnp.dot(h.astype(jnp.bfloat16), w.astype(jnp.bfloat16),
                    preferred_element_type=jnp.float32) + b
        if i < len(params) - 1:
            h = jnp.maximum(h, 0.0)
    return h.astype(jnp.bfloat16)


def reference_f32(x, params):
    h = x
    for i, (w, b) in enumerate(params):
        h = h @ w + b
        if i < len(params) - 1:
            h = jnp.maximum(h, 0.0)
    return h


if __name__ == "__main__":
    key = jax.random.PRNGKey(0)
    key, kx = jax.random.split(key)
    batch = 512                      # tile clamps to 128 -> grid of 4 (2 steps per v7x TC)
    x = jax.random.normal(kx, (batch, INPUT_DIM), jnp.float32)
    params = init_params(key)

    out = feedforward_nn(x, params, tm=512)
    out = jax.block_until_ready(out)
    assert out.shape == (batch, OUTPUT_DIM)

    out_f32 = out.astype(jnp.float32)
    # Tight check vs. a reference with identical numerics (bf16 in, f32 accum, bf16 out),
    # loose sanity check vs. the pure-f32 forward (bf16 rounding tolerance).
    ref_kern = reference_kernel_numerics(x, params).astype(jnp.float32)
    ref_f32 = reference_f32(x, params)
    assert jnp.allclose(out_f32, ref_kern, atol=2e-2, rtol=2e-2)
    assert jnp.allclose(out_f32, ref_f32, atol=1e-1, rtol=1e-1)
    print("KERNEL_OK")
</pallas_src>

<mosaic_0001>
module attributes {stable_mosaic.version = 11 : i64} {
  func.func @mlp_kernel(%arg0: i32, %arg1: memref<128x64xf32, #tpu.memory_space<vmem>>, %arg2: memref<64x256xbf16, #tpu.memory_space<vmem>>, %arg3: memref<1x256xf32, #tpu.memory_space<vmem>>, %arg4: memref<256x256xbf16, #tpu.memory_space<vmem>>, %arg5: memref<1x256xf32, #tpu.memory_space<vmem>>, %arg6: memref<256x128xbf16, #tpu.memory_space<vmem>>, %arg7: memref<1x128xf32, #tpu.memory_space<vmem>>, %arg8: memref<128x128xbf16, #tpu.memory_space<vmem>>, %arg9: memref<1x128xf32, #tpu.memory_space<vmem>>, %arg10: memref<128x128xbf16, #tpu.memory_space<vmem>>, %arg11: memref<1x128xf32, #tpu.memory_space<vmem>>, %arg12: memref<128x128xbf16, #tpu.memory_space<vmem>>, %arg13: memref<1x128xf32, #tpu.memory_space<vmem>>, %arg14: memref<128x128xbf16, #tpu.memory_space<vmem>>) attributes {dimension_semantics = [#tpu.dimension_semantics<parallel>], iteration_bounds = array<i64: 4>, scalar_prefetch = 0 : i64, scratch_operands = 0 : i64, tpu.core_type = #tpu.core_type<tc>, window_params = [{transform_indices = @transform_0, window_bounds = array<i64: 128, 64>}, {pipeline_mode = #tpu.pipeline_mode<synchronous>, transform_indices = @transform_1, window_bounds = array<i64: 64, 256>}, {pipeline_mode = #tpu.pipeline_mode<synchronous>, transform_indices = @transform_2, window_bounds = array<i64: 1, 256>}, {pipeline_mode = #tpu.pipeline_mode<synchronous>, transform_indices = @transform_3, window_bounds = array<i64: 256, 256>}, {pipeline_mode = #tpu.pipeline_mode<synchronous>, transform_indices = @transform_4, window_bounds = array<i64: 1, 256>}, {pipeline_mode = #tpu.pipeline_mode<synchronous>, transform_indices = @transform_5, window_bounds = array<i64: 256, 128>}, {pipeline_mode = #tpu.pipeline_mode<synchronous>, transform_indices = @transform_6, window_bounds = array<i64: 1, 128>}, {pipeline_mode = #tpu.pipeline_mode<synchronous>, transform_indices = @transform_7, window_bounds = array<i64: 128, 128>}, {pipeline_mode = #tpu.pipeline_mode<synchronous>, transform_indices = @transform_8, window_bounds = array<i64: 1, 128>}, {pipeline_mode = #tpu.pipeline_mode<synchronous>, transform_indices = @transform_9, window_bounds = array<i64: 128, 128>}, {pipeline_mode = #tpu.pipeline_mode<synchronous>, transform_indices = @transform_10, window_bounds = array<i64: 1, 128>}, {pipeline_mode = #tpu.pipeline_mode<synchronous>, transform_indices = @transform_11, window_bounds = array<i64: 128, 128>}, {pipeline_mode = #tpu.pipeline_mode<synchronous>, transform_indices = @transform_12, window_bounds = array<i64: 1, 128>}, {transform_indices = @transform_13, window_bounds = array<i64: 128, 128>}]} {
    %c0 = arith.constant 0 : index
    %c0_0 = arith.constant 0 : index
    %0 = vector.load %arg1[%c0, %c0_0] : memref<128x64xf32, #tpu.memory_space<vmem>>, vector<128x64xf32>
    %1 = arith.truncf %0 : vector<128x64xf32> to vector<128x64xbf16>
    %c0_1 = arith.constant 0 : index
    %c0_2 = arith.constant 0 : index
    %2 = vector.load %arg2[%c0_1, %c0_2] : memref<64x256xbf16, #tpu.memory_space<vmem>>, vector<64x256xbf16>
    %cst = arith.constant dense<0.000000e+00> : vector<128x256xf32>
    %3 = tpu.matmul %1, %2, %cst {dimension_numbers = #tpu.dot_dimension_numbers<[1], [0], [0], [1], [0, 0, 1, 1], [], []>} : vector<128x64xbf16>, vector<64x256xbf16>, vector<128x256xf32> -> vector<128x256xf32>
    %c0_3 = arith.constant 0 : index
    %c0_4 = arith.constant 0 : index
    %4 = vector.load %arg3[%c0_3, %c0_4] : memref<1x256xf32, #tpu.memory_space<vmem>>, vector<1x256xf32>
    %5 = vector.broadcast %4 : vector<1x256xf32> to vector<128x256xf32>
    %6 = arith.addf %3, %5 : vector<128x256xf32>
    %cst_5 = arith.constant 0.000000e+00 : f32
    %7 = vector.broadcast %cst_5 : f32 to vector<128x256xf32>
    %8 = arith.maximumf %6, %7 : vector<128x256xf32>
    %9 = arith.truncf %8 : vector<128x256xf32> to vector<128x256xbf16>
    %c0_6 = arith.constant 0 : index
    %c0_7 = arith.constant 0 : index
    %10 = vector.load %arg4[%c0_6, %c0_7] : memref<256x256xbf16, #tpu.memory_space<vmem>>, vector<256x256xbf16>
    %cst_8 = arith.constant dense<0.000000e+00> : vector<128x256xf32>
    %11 = tpu.matmul %9, %10, %cst_8 {dimension_numbers = #tpu.dot_dimension_numbers<[1], [0], [0], [1], [0, 0, 1, 1], [], []>} : vector<128x256xbf16>, vector<256x256xbf16>, vector<128x256xf32> -> vector<128x256xf32>
    %c0_9 = arith.constant 0 : index
    %c0_10 = arith.constant 0 : index
    %12 = vector.load %arg5[%c0_9, %c0_10] : memref<1x256xf32, #tpu.memory_space<vmem>>, vector<1x256xf32>
    %13 = vector.broadcast %12 : vector<1x256xf32> to vector<128x256xf32>
    %14 = arith.addf %11, %13 : vector<128x256xf32>
    %cst_11 = arith.constant 0.000000e+00 : f32
    %15 = vector.broadcast %cst_11 : f32 to vector<128x256xf32>
    %16 = arith.maximumf %14, %15 : vector<128x256xf32>
    %17 = arith.truncf %16 : vector<128x256xf32> to vector<128x256xbf16>
    %c0_12 = arith.constant 0 : index
    %c0_13 = arith.constant 0 : index
    %18 = vector.load %arg6[%c0_12, %c0_13] : memref<256x128xbf16, #tpu.memory_space<vmem>>, vector<256x128xbf16>
    %cst_14 = arith.constant dense<0.000000e+00> : vector<128x128xf32>
    %19 = tpu.matmul %17, %18, %cst_14 {dimension_numbers = #tpu.dot_dimension_numbers<[1], [0], [0], [1], [0, 0, 1, 1], [], []>} : vector<128x256xbf16>, vector<256x128xbf16>, vector<128x128xf32> -> vector<128x128xf32>
    %c0_15 = arith.constant 0 : index
    %c0_16 = arith.constant 0 : index
    %20 = vector.load %arg7[%c0_15, %c0_16] : memref<1x128xf32, #tpu.memory_space<vmem>>, vector<1x128xf32>
    %21 = vector.broadcast %20 : vector<1x128xf32> to vector<128x128xf32>
    %22 = arith.addf %19, %21 : vector<128x128xf32>
    %cst_17 = arith.constant 0.000000e+00 : f32
    %23 = vector.broadcast %cst_17 : f32 to vector<128x128xf32>
    %24 = arith.maximumf %22, %23 : vector<128x128xf32>
    %25 = arith.truncf %24 : vector<128x128xf32> to vector<128x128xbf16>
    %c0_18 = arith.constant 0 : index
    %c0_19 = arith.constant 0 : index
    %26 = vector.load %arg8[%c0_18, %c0_19] : memref<128x128xbf16, #tpu.memory_space<vmem>>, vector<128x128xbf16>
    %cst_20 = arith.constant dense<0.000000e+00> : vector<128x128xf32>
    %27 = tpu.matmul %25, %26, %cst_20 {dimension_numbers = #tpu.dot_dimension_numbers<[1], [0], [0], [1], [0, 0, 1, 1], [], []>} : vector<128x128xbf16>, vector<128x128xbf16>, vector<128x128xf32> -> vector<128x128xf32>
    %c0_21 = arith.constant 0 : index
    %c0_22 = arith.constant 0 : index
    %28 = vector.load %arg9[%c0_21, %c0_22] : memref<1x128xf32, #tpu.memory_space<vmem>>, vector<1x128xf32>
    %29 = vector.broadcast %28 : vector<1x128xf32> to vector<128x128xf32>
    %30 = arith.addf %27, %29 : vector<128x128xf32>
    %cst_23 = arith.constant 0.000000e+00 : f32
    %31 = vector.broadcast %cst_23 : f32 to vector<128x128xf32>
    %32 = arith.maximumf %30, %31 : vector<128x128xf32>
    %33 = arith.truncf %32 : vector<128x128xf32> to vector<128x128xbf16>
    %c0_24 = arith.constant 0 : index
    %c0_25 = arith.constant 0 : index
    %34 = vector.load %arg10[%c0_24, %c0_25] : memref<128x128xbf16, #tpu.memory_space<vmem>>, vector<128x128xbf16>
    %cst_26 = arith.constant dense<0.000000e+00> : vector<128x128xf32>
    %35 = tpu.matmul %33, %34, %cst_26 {dimension_numbers = #tpu.dot_dimension_numbers<[1], [0], [0], [1], [0, 0, 1, 1], [], []>} : vector<128x128xbf16>, vector<128x128xbf16>, vector<128x128xf32> -> vector<128x128xf32>
    %c0_27 = arith.constant 0 : index
    %c0_28 = arith.constant 0 : index
    %36 = vector.load %arg11[%c0_27, %c0_28] : memref<1x128xf32, #tpu.memory_space<vmem>>, vector<1x128xf32>
    %37 = vector.broadcast %36 : vector<1x128xf32> to vector<128x128xf32>
    %38 = arith.addf %35, %37 : vector<128x128xf32>
    %cst_29 = arith.constant 0.000000e+00 : f32
    %39 = vector.broadcast %cst_29 : f32 to vector<128x128xf32>
    %40 = arith.maximumf %38, %39 : vector<128x128xf32>
    %41 = arith.truncf %40 : vector<128x128xf32> to vector<128x128xbf16>
    %c0_30 = arith.constant 0 : index
    %c0_31 = arith.constant 0 : index
    %42 = vector.load %arg12[%c0_30, %c0_31] : memref<128x128xbf16, #tpu.memory_space<vmem>>, vector<128x128xbf16>
    %cst_32 = arith.constant dense<0.000000e+00> : vector<128x128xf32>
    %43 = tpu.matmul %41, %42, %cst_32 {dimension_numbers = #tpu.dot_dimension_numbers<[1], [0], [0], [1], [0, 0, 1, 1], [], []>} : vector<128x128xbf16>, vector<128x128xbf16>, vector<128x128xf32> -> vector<128x128xf32>
    %c0_33 = arith.constant 0 : index
    %c0_34 = arith.constant 0 : index
    %44 = vector.load %arg13[%c0_33, %c0_34] : memref<1x128xf32, #tpu.memory_space<vmem>>, vector<1x128xf32>
    %45 = vector.broadcast %44 : vector<1x128xf32> to vector<128x128xf32>
    %46 = arith.addf %43, %45 : vector<128x128xf32>
    %47 = arith.truncf %46 : vector<128x128xf32> to vector<128x128xbf16>
    %c0_35 = arith.constant 0 : index
    %c0_36 = arith.constant 0 : index
    %48 = vector.load %arg14[%c0_35, %c0_36] : memref<128x128xbf16, #tpu.memory_space<vmem>>, vector<128x128xbf16>
    tpu.vector_store %arg14[%c0_35, %c0_36], %47 {strides = array<i32>} : memref<128x128xbf16, #tpu.memory_space<vmem>>, vector<128x128xbf16>,
    return
  }
  func.func @transform_0(%arg0: i32) -> (i32, i32) {
    %c0_i32 = arith.constant 0 : i32
    %c0_i32_0 = arith.constant 0 : i32
    return %arg0, %c0_i32 : i32, i32
  }
  func.func @transform_1(%arg0: i32) -> (i32, i32) {
    %c0_i32 = arith.constant 0 : i32
    %c0_i32_0 = arith.constant 0 : i32
    %c0_i32_1 = arith.constant 0 : i32
    return %c0_i32, %c0_i32_0 : i32, i32
  }
  func.func @transform_2(%arg0: i32) -> (i32, i32) {
    %c0_i32 = arith.constant 0 : i32
    %c0_i32_0 = arith.constant 0 : i32
    %c0_i32_1 = arith.constant 0 : i32
    return %c0_i32, %c0_i32_0 : i32, i32
  }
  func.func @transform_3(%arg0: i32) -> (i32, i32) {
    %c0_i32 = arith.constant 0 : i32
    %c0_i32_0 = arith.constant 0 : i32
    %c0_i32_1 = arith.constant 0 : i32
    return %c0_i32, %c0_i32_0 : i32, i32
  }
  func.func @transform_4(%arg0: i32) -> (i32, i32) {
    %c0_i32 = arith.constant 0 : i32
    %c0_i32_0 = arith.constant 0 : i32
    %c0_i32_1 = arith.constant 0 : i32
    return %c0_i32, %c0_i32_0 : i32, i32
  }
  func.func @transform_5(%arg0: i32) -> (i32, i32) {
    %c0_i32 = arith.constant 0 : i32
    %c0_i32_0 = arith.constant 0 : i32
    %c0_i32_1 = arith.constant 0 : i32
    return %c0_i32, %c0_i32_0 : i32, i32
  }
  func.func @transform_6(%arg0: i32) -> (i32, i32) {
    %c0_i32 = arith.constant 0 : i32
    %c0_i32_0 = arith.constant 0 : i32
    %c0_i32_1 = arith.constant 0 : i32
    return %c0_i32, %c0_i32_0 : i32, i32
  }
  func.func @transform_7(%arg0: i32) -> (i32, i32) {
    %c0_i32 = arith.constant 0 : i32
    %c0_i32_0 = arith.constant 0 : i32
    %c0_i32_1 = arith.constant 0 : i32
    return %c0_i32, %c0_i32_0 : i32, i32
  }
  func.func @transform_8(%arg0: i32) -> (i32, i32) {
    %c0_i32 = arith.constant 0 : i32
    %c0_i32_0 = arith.constant 0 : i32
    %c0_i32_1 = arith.constant 0 : i32
    return %c0_i32, %c0_i32_0 : i32, i32
  }
  func.func @transform_9(%arg0: i32) -> (i32, i32) {
    %c0_i32 = arith.constant 0 : i32
    %c0_i32_0 = arith.constant 0 : i32
    %c0_i32_1 = arith.constant 0 : i32
    return %c0_i32, %c0_i32_0 : i32, i32
  }
  func.func @transform_10(%arg0: i32) -> (i32, i32) {
    %c0_i32 = arith.constant 0 : i32
    %c0_i32_0 = arith.constant 0 : i32
    %c0_i32_1 = arith.constant 0 : i32
    return %c0_i32, %c0_i32_0 : i32, i32
  }
  func.func @transform_11(%arg0: i32) -> (i32, i32) {
    %c0_i32 = arith.constant 0 : i32
    %c0_i32_0 = arith.constant 0 : i32
    %c0_i32_1 = arith.constant 0 : i32
    return %c0_i32, %c0_i32_0 : i32, i32
  }
  func.func @transform_12(%arg0: i32) -> (i32, i32) {
    %c0_i32 = arith.constant 0 : i32
    %c0_i32_0 = arith.constant 0 : i32
    %c0_i32_1 = arith.constant 0 : i32
    return %c0_i32, %c0_i32_0 : i32, i32
  }
  func.func @transform_13(%arg0: i32) -> (i32, i32) {
    %c0_i32 = arith.constant 0 : i32
    %c0_i32_0 = arith.constant 0 : i32
    return %arg0, %c0_i32 : i32, i32
  }
}

</mosaic_0001>

<bundles_post_ra>
// kernel: tpu_custom_call.1
= control target key start
LH: loop header
LB: loop body
LE: loop exit
PB: predicated region body
PF: predicated region fallthrough
CT: control target
= control target key end

     0   :  { %s3245_s0 = inlined_call_operand.vmem [shape: f32[512,64], index: 0, kind: input, shape index: {}]   ;;  %s3246_s1 = inlined_call_operand.vmem [shape: bf16[64,256], index: 1, kind: input, shape index: {}]   ;;  %s3247_s2 = inlined_call_operand.vmem [shape: f32[1,256], index: 2, kind: input, shape index: {}]   ;;  %s3248_s3 = inlined_call_operand.vmem [shape: bf16[256,256], index: 3, kind: input, shape index: {}]   ;;  %s3249_s4 = inlined_call_operand.vmem [shape: f32[1,256], index: 4, kind: input, shape index: {}]   ;;  %s3250_s5 = inlined_call_operand.vmem [shape: bf16[256,128], index: 5, kind: input, shape index: {}]   ;;  %s3251_s6 = inlined_call_operand.vmem [shape: f32[1,128], index: 6, kind: input, shape index: {}]   ;;  %s3252_s7 = inlined_call_operand.vmem [shape: bf16[128,128], index: 7, kind: input, shape index: {}]   ;;  %s3253_s8 = inlined_call_operand.vmem [shape: f32[1,128], index: 8, kind: input, shape index: {}]   ;;  %s3254_s9 = inlined_call_operand.vmem [shape: bf16[128,128], index: 9, kind: input, shape index: {}]   ;;  %s3255_s10 = inlined_call_operand.vmem [shape: f32[1,128], index: 10, kind: input, shape index: {}]   ;;  %s3256_s11 = inlined_call_operand.vmem [shape: bf16[128,128], index: 11, kind: input, shape index: {}]   ;;  %s3257_s12 = inlined_call_operand.vmem [shape: f32[1,128], index: 12, kind: input, shape index: {}]   ;;  %s3258_s13 = inlined_call_operand.hbm [shape: bf16[512,128], index: 13, kind: output, shape index: {}]  }
   0x1   :  { %3263 = sst [smem:[#allocation9_spill]] %s3245_s0 }
   0x2   :  { %18 = vsyncpa [#allocation3], 0 }
   0x3   :  { %20 = vsyncpa [#allocation3 + $0x1], 0  ;;  %s2562_s25 = smov 0   ;;  %s2564_s26 = smov 0  }
   0x4   :  { %s2566_s27 = smov 0   ;;  %s2568_s28 = smov 0  }
   0x5 LB: > { %3264 = sst [smem:[#allocation5_spill]] %s2484_s27  ;;  %s2583_s29 = sadd.s32 4294967295, %s2488_s28   ;;  %s2488_s28 = sphi %s2568_s28, %s3272_s28   ;;  %s2484_s27 = sphi %s2566_s27, %s3274_s27   ;;  %s2480_s26 = sphi %s2564_s26, %s3276_s26   ;;  %s2476_s25 = sphi %s2562_s25, %s3275_s25  }
   0x6   : > { %s1897_s30 = sadd.s32 4294967294, %s2488_s28   ;;  %s2587_s14 = sadd.s32 1, %s2488_s28  }
   0x7   : > { %3265 = sst [smem:[#allocation6_spill]] %s2587_s14  ;;  %s311_s15 = sadd.s32 1, %s2484_s27 }
   0x8   : > { %s308_s16 = ssub.s32 %s2488_s28, %s2587_s14  ;;  %p321_p0 = scmp.ne.s32.totalorder %s2484_s27, %s2480_s26 }
   0x9   : > { %p309_p1 = scmp.eq.s32.totalorder %s308_s16, 0  ;;  %p322_p2 = scmp.eq.s32.totalorder %s2583_s29, 3 }
   0xa   : > { %p327_p3 = scmp.ne.s32.totalorder %s2480_s26, %s2476_s25  ;;  %p328_p4 = scmp.eq.s32.totalorder %s1897_s30, 3 }
   0xb   : > { %s2598_s17 = scalar_select %p309_p1, %s2484_s27, %s311_s15  }
   0xc   : > { %p2600_p5 = por %p322_p2, %p321_p0  ;;  %p2604_p6 = por %p328_p4, %p327_p3 }
   0xd   : > { %3266 = sst [smem:[#allocation7_spill]] %s2598_s17  ;;  %p1900_p7 = scmp.ge.s32.totalorder %s2488_s28, 1 }
   0xe   : > { %s3268_s19 = scalar_select %p2604_p6, 1, 0 }
   0xf   : > { %p391_p8 = scmp.lt.s32.totalorder %s2488_s28, 5 }
  0x10   : > { %3269 = sst [smem:[#allocation8_spill]] %s3268_s19 }
  0x11   : > { %p392_p9 = pnand %p1900_p7, %p391_p8 }
  0x12   : > { %s1902_s24 = sshll.u32 (!%p392_p9), %s2583_s29, 4  ;;  %s3270_s0 = sld [smem:[#allocation9_spill]] (!%p392_p9) }
  0x13   : > { %395 = sbr.rel (%p392_p9) target bundleno = 1144 (0x478), region = 72  ;;  %p436_p10 = scmp.lt.s32.totalorder (!%p392_p9), %s1902_s24, 63 }
  0x14   : > { %s2325_s14 = sshll.u32 (!%p392_p9), %s2583_s29, 6 }
  0x15   : > { %s1831_s15 = scalar_lea.hbm (!%p392_p9), %s3258_s13, %s2325_s14 }
  0x18   : > { %v1930_v0 = vld [vmem:[%s3246_s1 + $0x30] sm:$0xf]  ;;  %v2252_v1 = vld [vmem:[%s3246_s1 + $0x34] sm:$0xf0]  ;;  %v2251_v2 = vld [vmem:[%s3246_s1 + $0x34] sm:$0xf] }
  0x19   : > { %v1931_v3 = vor.u32 %v2252_v1, %v1930_v0  ;;  %v1932_v4 = vld [vmem:[%s3246_s1 + $0x38] sm:$0xf0]  ;;  %v1922_v5 = vld [vmem:[%s3246_s1 + $0x20] sm:$0xf]  ;;  %v2250_v6 = vld [vmem:[%s3246_s1 + $0x24] sm:$0xf0] }
  0x1a   : > { %v1935_v7 = vor.u32 %v2251_v2, %v1932_v4  ;;  %v2249_v8 = vld [vmem:[%s3246_s1 + $0x24] sm:$0xf]  ;;  %v1924_v9 = vld [vmem:[%s3246_s1 + $0x28] sm:$0xf0]  ;;  %v1923_v10 = vor.u32 %v2250_v6, %v1922_v5  ;;  %v1914_v12 = vld [vmem:[%s3246_s1 + $0x10] sm:$0xf] }
  0x1b   : > { %550 = vmatpush.bf16.msra.mxu0 %v1931_v3  ;;  %v1927_v11 = vor.u32 %v2249_v8, %v1924_v9  ;;  %v2248_v13 = vld [vmem:[%s3246_s1 + $0x14] sm:$0xf0]  ;;  %v2247_v14 = vld [vmem:[%s3246_s1 + $0x14] sm:$0xf]  ;;  %v1916_v15 = vld [vmem:[%s3246_s1 + $0x18] sm:$0xf0] }
  0x1c   : > { %599 = vmatpush.bf16.msra.mxu1 %v1935_v7  ;;  %v1915_v16 = vor.u32 %v2248_v13, %v1914_v12  ;;  %v1919_v17 = vor.u32 %v2247_v14, %v1916_v15  ;;  %v1906_v18 = vld [vmem:[%s3246_s1] sm:$0xf]  ;;  %v2246_v19 = vld [vmem:[%s3246_s1 + $0x4] sm:$0xf0]  ;;  %s3278_s24 = smov (!%p436_p10, %s1902_s24), 63  ;;  %vm521_vm0 = vcmask 523264  }
  0x1d   : > { %v2245_v20 = vld [vmem:[%s3246_s1 + $0x4] sm:$0xf]  ;;  %v1908_v21 = vld [vmem:[%s3246_s1 + $0x8] sm:$0xf0]  ;;  %s1903_s23 = sshll.u32 %s3278_s24, 3  ;;  %v1907_v22 = vor.u32 %v2246_v19, %v1906_v18 }
  0x1e   : > { %s2662_s30 = scalar_lea.vmem %s3270_s0, %s1903_s23  ;;  %v1911_v23 = vor.u32 %v2245_v20, %v1908_v21  ;;  %v2010_v39 = vld [vmem:[%s3248_s3 + $0x70] sm:$0xf]  ;;  %v2268_v40 = vld [vmem:[%s3248_s3 + $0x74] sm:$0xf0]  ;;  %v2267_v41 = vld [vmem:[%s3248_s3 + $0x74] sm:$0xf] }
  0x1f   : > { %551 = vmatpush.bf16.msra.mxu0 %v1923_v10  ;;  %v443_v24 = vld [vmem:[%s2662_s30] sm:$0xff]  ;;  %v444_v25 = vld [vmem:[%s2662_s30 + $0x8] sm:$0xff]  ;;  %v445_v27 = vld [vmem:[%s2662_s30 + $0x10] sm:$0xff]  ;;  %v2011_v42 = vor.u32 %v2268_v40, %v2010_v39  ;;  %s432_s0 = sand.u32 1, %s2480_s26  }
  0x20   : > { %600 = vmatpush.bf16.msra.mxu1 %v1927_v11  ;;  %v459_v26 = vpack.c.bf16 %v444_v25, %v443_v24  ;;  %v446_v28 = vld [vmem:[%s2662_s30 + $0x18] sm:$0xff]  ;;  %v447_v30 = vld [vmem:[%s2662_s30 + $0x20] sm:$0xff]  ;;  %v448_v31 = vld [vmem:[%s2662_s30 + $0x28] sm:$0xff]  ;;  %s1901_s22 = sshll.u32 %s432_s0, 6  ;;  %s1820_s17 = scalar_lea.sflag [#allocation3], %s432_s0 }
  0x21   : > { %v460_v29 = vpack.c.bf16 %v446_v28, %v445_v27  ;;  %v461_v32 = vpack.c.bf16 %v448_v31, %v447_v30  ;;  %v449_v33 = vld [vmem:[%s2662_s30 + $0x30] sm:$0xff]  ;;  %v450_v34 = vld [vmem:[%s2662_s30 + $0x38] sm:$0xff]  ;;  %v451_v36 = vld [vmem:[%s2662_s30 + $0x40] sm:$0xff]  ;;  %890 = vmatpush.bf16.msra.mxu2 %v2011_v42  ;;  %2373 = vmatpush.bf16.msra.mxu3 %v2011_v42  ;;  %s3201_s23 = scalar_lea.vmem [#allocation2], %s1901_s22  ;;  %s2446_s22 = scalar_lea.hbm %s3258_s13, 256 }
  0x22   : > { %v462_v35 = vpack.c.bf16 %v450_v34, %v449_v33  ;;  %v452_v37 = vld [vmem:[%s2662_s30 + $0x48] sm:$0xff]  ;;  %v2012_v43 = vld [vmem:[%s3248_s3 + $0x78] sm:$0xf0]  ;;  %v2283_v44 = vld [vmem:[%s3248_s3 + $0xf4] sm:$0xf]  ;;  %s1832_s27 = sshll.u32 %s3201_s23, 4  ;;  %s1833_s27 = int_to_ptr.vmem [resolvable:$true] %s1832_s27 }
  0x23   : > { %552 = vmatpush.bf16.msra.mxu0 %v1915_v16  ;;  %v463_v38 = vpack.c.bf16 %v452_v37, %v451_v36  ;;  %v2076_v45 = vld [vmem:[%s3248_s3 + $0xf8] sm:$0xf0]  ;;  %v2015_v46 = vor.u32 %v2267_v41, %v2012_v43  ;;  %v453_v48 = vld [vmem:[%s2662_s30 + $0x50] sm:$0xff]  ;;  %v2002_v51 = vld [vmem:[%s3248_s3 + $0x60] sm:$0xf] }
  0x24   : > { %601 = vmatpush.bf16.msra.mxu1 %v1919_v17  ;;  %v2079_v47 = vor.u32 %v2283_v44, %v2076_v45  ;;  %v454_v49 = vld [vmem:[%s2662_s30 + $0x58] sm:$0xff]  ;;  %v2266_v52 = vld [vmem:[%s3248_s3 + $0x64] sm:$0xf0]  ;;  %v2265_v53 = vld [vmem:[%s3248_s3 + $0x64] sm:$0xf] }
  0x25   : > { %v464_v50 = vpack.c.bf16 %v454_v49, %v453_v48  ;;  %v2003_v54 = vor.u32 %v2266_v52, %v2002_v51  ;;  %v2004_v55 = vld [vmem:[%s3248_s3 + $0x68] sm:$0xf0]  ;;  %v2281_v57 = vld [vmem:[%s3248_s3 + $0xe4] sm:$0xf]  ;;  %v1994_v60 = vld [vmem:[%s3248_s3 + $0x50] sm:$0xf] }
  0x26   : > { %v2007_v56 = vor.u32 %v2265_v53, %v2004_v55  ;;  %v2068_v58 = vld [vmem:[%s3248_s3 + $0xe8] sm:$0xf0]  ;;  %v2264_v61 = vld [vmem:[%s3248_s3 + $0x54] sm:$0xf0]  ;;  %v2263_v62 = vld [vmem:[%s3248_s3 + $0x54] sm:$0xf] }
  0x27   : > { %553 = vmatpush.bf16.msra.mxu0 %v1907_v22  ;;  %891 = vmatpush.bf16.msra.mxu2 %v2003_v54  ;;  %v2071_v59 = vor.u32 %v2281_v57, %v2068_v58  ;;  %v1995_v63 = vor.u32 %v2264_v61, %v1994_v60  ;;  %v1996_v0 = vld [vmem:[%s3248_s3 + $0x58] sm:$0xf0]  ;;  %v2279_v1 = vld [vmem:[%s3248_s3 + $0xd4] sm:$0xf]  ;;  %v1986_v5 = vld [vmem:[%s3248_s3 + $0x40] sm:$0xf] }
  0x28   : > { %602 = vmatpush.bf16.msra.mxu1 %v1911_v23  ;;  %v2060_v2 = vld [vmem:[%s3248_s3 + $0xd8] sm:$0xf0]  ;;  %2374 = vmatpush.bf16.msra.mxu3 %v2003_v54  ;;  %v1999_v3 = vor.u32 %v2263_v62, %v1996_v0  ;;  %v2262_v6 = vld [vmem:[%s3248_s3 + $0x44] sm:$0xf0]  ;;  %v2261_v7 = vld [vmem:[%s3248_s3 + $0x44] sm:$0xf] }
  0x29   : > { %v2063_v4 = vor.u32 %v2279_v1, %v2060_v2  ;;  %v1988_v8 = vld [vmem:[%s3248_s3 + $0x48] sm:$0xf0]  ;;  %v2277_v9 = vld [vmem:[%s3248_s3 + $0xc4] sm:$0xf]  ;;  %v1987_v11 = vor.u32 %v2262_v6, %v1986_v5  ;;  %v1978_v16 = vld [vmem:[%s3248_s3 + $0x30] sm:$0xf] }
  0x2a   : > { %1936 = vmatmul.msk.bf16.vlgmr.msra.gmra.mxu0 %vm521_vm0, %v459_v26  ;;  %v2052_v10 = vld [vmem:[%s3248_s3 + $0xc8] sm:$0xf0]  ;;  %v1991_v12 = vor.u32 %v2261_v7, %v1988_v8  ;;  %v455_v14 = vld [vmem:[%s2662_s30 + $0x60] sm:$0xff]  ;;  %v2260_v17 = vld [vmem:[%s3248_s3 + $0x34] sm:$0xf0] }
  0x2b   : > { %1944 = vmatmul.msk.bf16.vlgmr.msra.gmra.mxu1 %vm521_vm0, %v459_v26  ;;  %988 = vmatpush.bf16.msrb.mxu0 %v2015_v46  ;;  %v2055_v13 = vor.u32 %v2277_v9, %v2052_v10  ;;  %v456_v15 = vld [vmem:[%s2662_s30 + $0x68] sm:$0xff]  ;;  %v2259_v18 = vld [vmem:[%s3248_s3 + $0x34] sm:$0xf]  ;;  %v1979_v19 = vor.u32 %v2260_v17, %v1978_v16  ;;  %v1980_v20 = vld [vmem:[%s3248_s3 + $0x38] sm:$0xf0] }
  0x2c   : > { %1037 = vmatpush.bf16.msrb.mxu1 %v2079_v47  ;;  %892 = vmatpush.bf16.msra.mxu2 %v1995_v63  ;;  %v465_v21 = vpack.c.bf16 %v456_v15, %v455_v14  ;;  %v1983_v22 = vor.u32 %v2259_v18, %v1980_v20  ;;  %v2275_v23 = vld [vmem:[%s3248_s3 + $0xb4] sm:$0xf]  ;;  %v2044_v24 = vld [vmem:[%s3248_s3 + $0xb8] sm:$0xf0]  ;;  %v1970_v26 = vld [vmem:[%s3248_s3 + $0x20] sm:$0xf] }
  0x2d   : > { %2375 = vmatpush.bf16.msra.mxu3 %v1995_v63  ;;  %v2047_v25 = vor.u32 %v2275_v23, %v2044_v24  ;;  %v2258_v27 = vld [vmem:[%s3248_s3 + $0x24] sm:$0xf0]  ;;  %v2257_v28 = vld [vmem:[%s3248_s3 + $0x24] sm:$0xf]  ;;  %v1972_v30 = vld [vmem:[%s3248_s3 + $0x28] sm:$0xf0] }
  0x2e   : > { %v1975_v31 = vor.u32 %v2257_v28, %v1972_v30  ;;  %v2036_v33 = vld [vmem:[%s3248_s3 + $0xa8] sm:$0xf0]  ;;  %v2256_v36 = vld [vmem:[%s3248_s3 + $0x14] sm:$0xf0]  ;;  %v2255_v37 = vld [vmem:[%s3248_s3 + $0x14] sm:$0xf] }
  0x2f   : > { %989 = vmatpush.bf16.msrb.mxu0 %v2007_v56  ;;  %v1964_v39 = vld [vmem:[%s3248_s3 + $0x18] sm:$0xf0]  ;;  %v2271_v41 = vld [vmem:[%s3248_s3 + $0x94] sm:$0xf]  ;;  %v1954_v44 = vld [vmem:[%s3248_s3] sm:$0xf] }
  0x30   : > { %1038 = vmatpush.bf16.msrb.mxu1 %v2071_v59  ;;  %893 = vmatpush.bf16.msra.mxu2 %v1987_v11  ;;  %v1967_v40 = vor.u32 %v2255_v37, %v1964_v39  ;;  %v2028_v42 = vld [vmem:[%s3248_s3 + $0x98] sm:$0xf0]  ;;  %v2254_v45 = vld [vmem:[%s3248_s3 + $0x4] sm:$0xf0]  ;;  %v2253_v46 = vld [vmem:[%s3248_s3 + $0x4] sm:$0xf] }
  0x31   : > { %2376 = vmatpush.bf16.msra.mxu3 %v1987_v11  ;;  %v2031_v43 = vor.u32 %v2271_v41, %v2028_v42  ;;  %v1955_v47 = vor.u32 %v2254_v45, %v1954_v44  ;;  %v1956_v48 = vld [vmem:[%s3248_s3 + $0x8] sm:$0xf0]  ;;  %v457_v52 = vld [vmem:[%s2662_s30 + $0x70] sm:$0xff]  ;;  %v458_v53 = vld [vmem:[%s2662_s30 + $0x78] sm:$0xff]  ;;  %s1834_s30 = sshll.u32 %s1831_s15, 4  ;;  %s1835_s30 = int_to_ptr.hbm [resolvable:$true] %s1834_s30 }
  0x32   : > { %v1959_v49 = vor.u32 %v2253_v46, %v1956_v48  ;;  %v2020_v51 = vld [vmem:[%s3248_s3 + $0x88] sm:$0xf0]  ;;  %v466_v55 = vpack.c.bf16 %v458_v53, %v457_v52  ;;  %v475_v56 = vld [vmem:[%s3247_s2] sm:$0x3]  ;;  %v2074_v9 = vld [vmem:[%s3248_s3 + $0xf0] sm:$0xf] }
  0x33   : > { %990 = vmatpush.bf16.msrb.mxu0 %v1999_v3  ;;  %v2843_v59 = vperm.slane %v475_v56, 1  ;;  %v2845_v60 = vperm.slane %v475_v56, 0  ;;  %v2284_v10 = vld [vmem:[%s3248_s3 + $0xf4] sm:$0xf0]  ;;  %v2066_v24 = vld [vmem:[%s3248_s3 + $0xe0] sm:$0xf] }
  0x34   : > { %1039 = vmatpush.bf16.msrb.mxu1 %v2063_v4  ;;  %894 = vmatpush.bf16.msra.mxu2 %v1979_v19  ;;  %v2050_v48 = vld [vmem:[%s3248_s3 + $0xc0] sm:$0xf]  ;;  %s2440_s16 = sshra.s32 %s1835_s30, 4  ;;  %s2441_s16 = int_to_ptr.hbm [resolvable:$true] %s2440_s16 }
  0x35   : > { %2377 = vmatpush.bf16.msra.mxu3 %v1979_v19  ;;  %s2442_s20 = scalar_lea.hbm %s2441_s16, 64  ;;  %p2447_p0 = scmp.lt.s32.totalorder %s2441_s16, %s3258_s13 }
  0x36   : > { %p2443_p11 = scmp.ne.s32.totalorder %s2441_s16, %s2442_s20  ;;  %p2448_p1 = scmp.lt.s32.totalorder %s2446_s22, %s2442_s20 }
  0x37   : > { %991 = vmatpush.bf16.msrb.mxu0 %v1991_v12  ;;  %v2075_v12 = vor.u32 %v2284_v10, %v2074_v9 }
  0x38   : > { %1040 = vmatpush.bf16.msrb.mxu1 %v2055_v13  ;;  %p2444_p12 = pnand %p2443_p11, %p2600_p5  ;;  %p2449_p2 = por %p2448_p1, %p2447_p0 }
  0x3a   : > { %1937 = vmatmul.msk.bf16.gmra.mxu0 %vm521_vm0, %v460_v29  ;;  %p2445_p13 = pneg %p2444_p12 }
  0x3b   : > { %1945 = vmatmul.msk.bf16.gmra.mxu1 %vm521_vm0, %v460_v29  ;;  %992 = vmatpush.bf16.msrb.mxu0 %v1983_v22  ;;  %v1971_v29 = vor.u32 %v2258_v27, %v1970_v26 }
  0x3c   : > { %1041 = vmatpush.bf16.msrb.mxu1 %v2047_v25  ;;  %v2282_v25 = vld [vmem:[%s3248_s3 + $0xe4] sm:$0xf0]  ;;  %p2450_p3 = pnand %p2449_p2, %p2445_p13 }
  0x3d   : > { %895 = vmatpush.bf16.msra.mxu2 %v1971_v29  ;;  %2378 = vmatpush.bf16.msra.mxu3 %v1971_v29  ;;  %v2067_v27 = vor.u32 %v2282_v25, %v2066_v24  ;;  %v2026_v24 = vld [vmem:[%s3248_s3 + $0x90] sm:$0xf]  ;;  %v2272_v25 = vld [vmem:[%s3248_s3 + $0x94] sm:$0xf0] }
  0x3f   : > { %993 = vmatpush.bf16.msrb.mxu0 %v1975_v31  ;;  %v2058_v31 = vld [vmem:[%s3248_s3 + $0xd0] sm:$0xf] }
  0x43   : > { %994 = vmatpush.bf16.msrb.mxu0 %v1967_v40 }
  0x47   : > { %995 = vmatpush.bf16.msrb.mxu0 %v1959_v49  ;;  %v2278_v49 = vld [vmem:[%s3248_s3 + $0xc4] sm:$0xf0] }
  0x4a   : > { %1938 = vmatmul.msk.bf16.gmra.mxu0 %vm521_vm0, %v461_v32 }
  0x4b   : > { %1946 = vmatmul.msk.bf16.gmra.mxu1 %vm521_vm0, %v461_v32  ;;  %v2273_v32 = vld [vmem:[%s3248_s3 + $0xa4] sm:$0xf] }
  0x4c   : > { %v2039_v34 = vor.u32 %v2273_v32, %v2036_v33  ;;  %v2280_v32 = vld [vmem:[%s3248_s3 + $0xd4] sm:$0xf0] }
  0x4d   : > { %v2059_v33 = vor.u32 %v2280_v32, %v2058_v31 }
  0x4e   : > { %1042 = vmatpush.bf16.msrb.mxu1 %v2039_v34 }
  0x52   : > { %1043 = vmatpush.bf16.msrb.mxu1 %v2031_v43 }
  0x5a   : > { %1939 = vmatmul.msk.bf16.gmra.mxu0 %vm521_vm0, %v462_v35 }
  0x5b   : > { %1947 = vmatmul.msk.bf16.gmra.mxu1 %vm521_vm0, %v462_v35  ;;  %v1962_v35 = vld [vmem:[%s3248_s3 + $0x10] sm:$0xf] }
  0x6a   : > { %1940 = vmatmul.msk.bf16.gmra.mxu0 %vm521_vm0, %v463_v38 }
  0x6b   : > { %1948 = vmatmul.msk.bf16.gmra.mxu1 %vm521_vm0, %v463_v38  ;;  %v1963_v38 = vor.u32 %v2256_v36, %v1962_v35 }
  0x6d   : > { %896 = vmatpush.bf16.msra.mxu2 %v1963_v38  ;;  %2379 = vmatpush.bf16.msra.mxu3 %v1963_v38 }
  0x71   : > { %897 = vmatpush.bf16.msra.mxu2 %v1955_v47  ;;  %2380 = vmatpush.bf16.msra.mxu3 %v1955_v47 }
  0x75   : > { %939 = vmatpush.bf16.msrb.mxu3 %v2075_v12 }
  0x79   : > { %940 = vmatpush.bf16.msrb.mxu3 %v2067_v27 }
  0x7a   : > { %1941 = vmatmul.msk.bf16.gmra.mxu0 %vm521_vm0, %v464_v50 }
  0x7b   : > { %1949 = vmatmul.msk.bf16.gmra.mxu1 %vm521_vm0, %v464_v50  ;;  %v2269_v50 = vld [vmem:[%s3248_s3 + $0x84] sm:$0xf] }
  0x7c   : > { %v2023_v54 = vor.u32 %v2269_v50, %v2020_v51  ;;  %v2051_v50 = vor.u32 %v2278_v49, %v2050_v48 }
  0x7d   : > { %941 = vmatpush.bf16.msrb.mxu3 %v2059_v33 }
  0x7e   : > { %1044 = vmatpush.bf16.msrb.mxu1 %v2023_v54 }
  0x81   : > { %942 = vmatpush.bf16.msrb.mxu3 %v2051_v50 }
  0x8a   : > { %1942 = vmatmul.msk.bf16.gmra.mxu0 %vm521_vm0, %v465_v21 }
  0x8b   : > { %1950 = vmatmul.msk.bf16.gmra.mxu1 %vm521_vm0, %v465_v21 }
  0x9a   : > { %1943 = vmatmul.msk.bf16.gmra.mxu0 %vm521_vm0, %v466_v55 }
  0x9b   : > { %1951 = vmatmul.msk.bf16.gmra.mxu1 %vm521_vm0, %v466_v55 }
  0xa7   : > { %v555_v57 = vpop.f32.mrf.mxu0 }
  0xa8   : > { %v604_v58 = vpop.f32.mrf.mxu1  ;;  %v556_v62 = vadd.f32 %v555_v57, %v2845_v60 }
  0xa9   : > { %v605_v61 = vadd.f32 %v604_v58, %v2843_v59 }
  0xaa   : > { %v644_v4 = vmax.f32 %v556_v62, 0.0 }
  0xab   : > { %v645_v2 = vmax.f32 %v605_v61, 0.0 }
  0xaf   : > { %v557_v63 = vpop.f32.mrf.mxu0 }
  0xb0   : > { %v558_v0 = vadd.f32 %v557_v63, %v2845_v60  ;;  %v606_v1 = vpop.f32.mrf.mxu1 }
  0xb1   : > { %v607_v3 = vadd.f32 %v606_v1, %v2843_v59  ;;  %v2042_v1 = vld [vmem:[%s3248_s3 + $0xb0] sm:$0xf] }
  0xb2   : > { %v646_v5 = vmax.f32 %v558_v0, 0.0 }
  0xb3   : > { %v647_v6 = vmax.f32 %v607_v3, 0.0 }
  0xb4   : > { %v676_v7 = vpack.c.bf16 %v646_v5, %v644_v4 }
  0xb5   : > { %v2851_v8 = vpack.c.bf16 %v647_v6, %v645_v2  ;;  %v2276_v2 = vld [vmem:[%s3248_s3 + $0xb4] sm:$0xf0] }
  0xb6   : > { %898 = vmatmul.bf16.vlgmr.msra.gmra.mxu2 %v676_v7  ;;  %996 = vmatmul.bf16.vlgmr.msrb.gmra.mxu0 %v676_v7  ;;  %v2043_v4 = vor.u32 %v2276_v2, %v2042_v1 }
  0xb7   : > { %v560_v11 = vpop.f32.mrf.mxu0  ;;  %1045 = vmatmul.bf16.vlgmr.msrb.gmra.mxu1 %v2851_v8 }
  0xb8   : > { %v609_v13 = vpop.f32.mrf.mxu1  ;;  %v561_v15 = vadd.f32 %v560_v11, %v2845_v60  ;;  %943 = vmatpush.bf16.msrb.mxu3 %v2043_v4 }
  0xb9   : > { %v610_v14 = vadd.f32 %v609_v13, %v2843_v59 }
  0xba   : > { %v648_v21 = vmax.f32 %v561_v15, 0.0 }
  0xbb   : > { %v649_v19 = vmax.f32 %v610_v14, 0.0 }
  0xbf   : > { %v562_v16 = vpop.f32.mrf.mxu0 }
  0xc0   : > { %v563_v17 = vadd.f32 %v562_v16, %v2845_v60  ;;  %v611_v18 = vpop.f32.mrf.mxu1 }
  0xc1   : > { %v612_v20 = vadd.f32 %v611_v18, %v2843_v59  ;;  %v2274_v18 = vld [vmem:[%s3248_s3 + $0xa4] sm:$0xf0] }
  0xc2   : > { %v650_v22 = vmax.f32 %v563_v17, 0.0  ;;  %v2034_v17 = vld [vmem:[%s3248_s3 + $0xa0] sm:$0xf] }
  0xc3   : > { %v651_v23 = vmax.f32 %v612_v20, 0.0  ;;  %v2035_v20 = vor.u32 %v2274_v18, %v2034_v17  ;;  %v2295_v17 = vld [vmem:[%s3250_s5 + $0x50] sm:$0xff] }
  0xc4   : > { %v678_v26 = vpack.c.bf16 %v650_v22, %v648_v21 }
  0xc5   : > { %v2870_v28 = vpack.c.bf16 %v651_v23, %v649_v19  ;;  %944 = vmatpush.bf16.msrb.mxu3 %v2035_v20  ;;  %v2292_v20 = vld [vmem:[%s3250_s5 + $0x38] sm:$0xff] }
  0xc6   : > { %903 = vmatmul.bf16.gmra.mxu2 %v678_v26  ;;  %1001 = vmatmul.bf16.gmra.mxu0 %v678_v26  ;;  %v2027_v26 = vor.u32 %v2272_v25, %v2026_v24  ;;  %v2291_v24 = vld [vmem:[%s3250_s5 + $0x30] sm:$0xff] }
  0xc7   : > { %v565_v29 = vpop.f32.mrf.mxu0  ;;  %1050 = vmatmul.bf16.gmra.mxu1 %v2870_v28  ;;  %1266 = vmatpush.bf16.msrb.mxu2 %v2292_v20 }
  0xc8   : > { %v614_v30 = vpop.f32.mrf.mxu1  ;;  %v566_v35 = vadd.f32 %v565_v29, %v2845_v60 }
  0xc9   : > { %v615_v34 = vadd.f32 %v614_v30, %v2843_v59  ;;  %945 = vmatpush.bf16.msrb.mxu3 %v2027_v26  ;;  %v2290_v26 = vld [vmem:[%s3250_s5 + $0x28] sm:$0xff] }
  0xca   : > { %v652_v41 = vmax.f32 %v566_v35, 0.0 }
  0xcb   : > { %v653_v39 = vmax.f32 %v615_v34, 0.0  ;;  %1267 = vmatpush.bf16.msrb.mxu2 %v2291_v24 }
  0xcf   : > { %v567_v36 = vpop.f32.mrf.mxu0  ;;  %1268 = vmatpush.bf16.msrb.mxu2 %v2290_v26 }
  0xd0   : > { %v568_v37 = vadd.f32 %v567_v36, %v2845_v60  ;;  %v616_v38 = vpop.f32.mrf.mxu1 }
  0xd1   : > { %v617_v40 = vadd.f32 %v616_v38, %v2843_v59 }
  0xd2   : > { %v654_v42 = vmax.f32 %v568_v37, 0.0 }
  0xd3   : > { %v655_v43 = vmax.f32 %v617_v40, 0.0 }
  0xd4   : > { %v680_v44 = vpack.c.bf16 %v654_v42, %v652_v41  ;;  %v2018_v41 = vld [vmem:[%s3248_s3 + $0x80] sm:$0xf]  ;;  %v2270_v42 = vld [vmem:[%s3248_s3 + $0x84] sm:$0xf0] }
  0xd5   : > { %v2883_v45 = vpack.c.bf16 %v655_v43, %v653_v39 }
  0xd6   : > { %908 = vmatmul.bf16.vlgmr.msra.gmra.mxu3 %v680_v44  ;;  %1006 = vmatmul.bf16.gmra.mxu0 %v680_v44  ;;  %v2019_v44 = vor.u32 %v2270_v42, %v2018_v41  ;;  %v2285_v41 = vld [vmem:[%s3250_s5] sm:$0xff] }
  0xd7   : > { %v570_v46 = vpop.f32.mrf.mxu0  ;;  %1055 = vmatmul.bf16.gmra.mxu1 %v2883_v45 }
  0xd8   : > { %v619_v47 = vpop.f32.mrf.mxu1  ;;  %v571_v52 = vadd.f32 %v570_v46, %v2845_v60  ;;  %946 = vmatpush.bf16.msrb.mxu3 %v2019_v44 }
  0xd9   : > { %v620_v51 = vadd.f32 %v619_v47, %v2843_v59 }
  0xda   : > { %v656_v58 = vmax.f32 %v571_v52, 0.0 }
  0xdb   : > { %v657_v56 = vmax.f32 %v620_v51, 0.0 }
  0xdf   : > { %v572_v53 = vpop.f32.mrf.mxu0 }
  0xe0   : > { %v573_v54 = vadd.f32 %v572_v53, %v2845_v60  ;;  %v621_v55 = vpop.f32.mrf.mxu1 }
  0xe1   : > { %v622_v57 = vadd.f32 %v621_v55, %v2843_v59 }
  0xe2   : > { %v658_v61 = vmax.f32 %v573_v54, 0.0 }
  0xe3   : > { %v659_v62 = vmax.f32 %v622_v57, 0.0 }
  0xe4   : > { %v682_v63 = vpack.c.bf16 %v658_v61, %v656_v58 }
  0xe5   : > { %v2896_v0 = vpack.c.bf16 %v659_v62, %v657_v56 }
  0xe6   : > { %913 = vmatmul.bf16.gmra.mxu3 %v682_v63  ;;  %1011 = vmatmul.bf16.gmra.mxu0 %v682_v63 }
  0xe7   : > { %v575_v3 = vpop.f32.mrf.mxu0  ;;  %1060 = vmatmul.bf16.gmra.mxu1 %v2896_v0 }
  0xe8   : > { %v624_v5 = vpop.f32.mrf.mxu1  ;;  %v576_v7 = vadd.f32 %v575_v3, %v2845_v60 }
  0xe9   : > { %v625_v6 = vadd.f32 %v624_v5, %v2843_v59 }
  0xea   : > { %v660_v14 = vmax.f32 %v576_v7, 0.0 }
  0xeb   : > { %v661_v12 = vmax.f32 %v625_v6, 0.0 }
  0xef   : > { %v577_v9 = vpop.f32.mrf.mxu0 }
  0xf0   : > { %v578_v10 = vadd.f32 %v577_v9, %v2845_v60  ;;  %v626_v11 = vpop.f32.mrf.mxu1 }
  0xf1   : > { %v627_v13 = vadd.f32 %v626_v11, %v2843_v59 }
  0xf2   : > { %v662_v15 = vmax.f32 %v578_v10, 0.0 }
  0xf3   : > { %v663_v16 = vmax.f32 %v627_v13, 0.0 }
  0xf4   : > { %v684_v19 = vpack.c.bf16 %v662_v15, %v660_v14 }
  0xf5   : > { %v2915_v21 = vpack.c.bf16 %v663_v16, %v661_v12  ;;  %v2300_v12 = vld [vmem:[%s3250_s5 + $0x78] sm:$0xff] }
  0xf6   : > { %918 = vmatmul.bf16.gmra.mxu3 %v684_v19  ;;  %1016 = vmatmul.bf16.gmra.mxu0 %v684_v19 }
  0xf7   : > { %v580_v22 = vpop.f32.mrf.mxu0  ;;  %1065 = vmatmul.bf16.gmra.mxu1 %v2915_v21  ;;  %1315 = vmatpush.bf16.msra.mxu3 %v2300_v12 }
  0xf8   : > { %v629_v23 = vpop.f32.mrf.mxu1  ;;  %v581_v29 = vadd.f32 %v580_v22, %v2845_v60 }
  0xf9   : > { %v630_v27 = vadd.f32 %v629_v23, %v2843_v59 }
  0xfa   : > { %v664_v35 = vmax.f32 %v581_v29, 0.0  ;;  %v2293_v29 = vld [vmem:[%s3250_s5 + $0x40] sm:$0xff] }
  0xfb   : > { %v665_v33 = vmax.f32 %v630_v27, 0.0 }
  0xff   : > { %v582_v30 = vpop.f32.mrf.mxu0 }
 0x100   : > { %v583_v31 = vadd.f32 %v582_v30, %v2845_v60  ;;  %v631_v32 = vpop.f32.mrf.mxu1  ;;  %v2289_v30 = vld [vmem:[%s3250_s5 + $0x20] sm:$0xff] }
 0x101   : > { %v632_v34 = vadd.f32 %v631_v32, %v2843_v59  ;;  %1269 = vmatpush.bf16.msrb.mxu2 %v2289_v30  ;;  %v2288_v32 = vld [vmem:[%s3250_s5 + $0x18] sm:$0xff] }
 0x102   : > { %v666_v36 = vmax.f32 %v583_v31, 0.0 }
 0x103   : > { %v667_v37 = vmax.f32 %v632_v34, 0.0 }
 0x104   : > { %v686_v38 = vpack.c.bf16 %v666_v36, %v664_v35  ;;  %v2287_v35 = vld [vmem:[%s3250_s5 + $0x10] sm:$0xff] }
 0x105   : > { %v2928_v39 = vpack.c.bf16 %v667_v37, %v665_v33  ;;  %1270 = vmatpush.bf16.msrb.mxu2 %v2288_v32  ;;  %v2286_v37 = vld [vmem:[%s3250_s5 + $0x8] sm:$0xff] }
 0x106   : > { %923 = vmatmul.bf16.gmra.mxu3 %v686_v38  ;;  %1021 = vmatmul.bf16.gmra.mxu0 %v686_v38 }
 0x107   : > { %v585_v40 = vpop.f32.mrf.mxu0  ;;  %1070 = vmatmul.bf16.gmra.mxu1 %v2928_v39 }
 0x108   : > { %v634_v43 = vpop.f32.mrf.mxu1  ;;  %v586_v47 = vadd.f32 %v585_v40, %v2845_v60  ;;  %v724_v40 = vld [vmem:[%s3249_s4] sm:$0x3] }
 0x109   : > { %v635_v46 = vadd.f32 %v634_v43, %v2843_v59  ;;  %1271 = vmatpush.bf16.msrb.mxu2 %v2287_v35  ;;  %v3026_v42 = vperm.slane %v724_v40, 1 }
 0x10a   : > { %v668_v53 = vmax.f32 %v586_v47, 0.0 }
 0x10b   : > { %v669_v51 = vmax.f32 %v635_v46, 0.0 }
 0x10d   : > { %1272 = vmatpush.bf16.msrb.mxu2 %v2286_v37 }
 0x10f   : > { %v587_v48 = vpop.f32.mrf.mxu0 }
 0x110   : > { %v588_v49 = vadd.f32 %v587_v48, %v2845_v60  ;;  %v636_v50 = vpop.f32.mrf.mxu1 }
 0x111   : > { %v637_v52 = vadd.f32 %v636_v50, %v2843_v59  ;;  %1273 = vmatpush.bf16.msrb.mxu2 %v2285_v41 }
 0x112   : > { %v670_v54 = vmax.f32 %v588_v49, 0.0 }
 0x113   : > { %v671_v55 = vmax.f32 %v637_v52, 0.0 }
 0x114   : > { %v688_v56 = vpack.c.bf16 %v670_v54, %v668_v53 }
 0x115   : > { %v2941_v57 = vpack.c.bf16 %v671_v55, %v669_v51 }
 0x116   : > { %928 = vmatmul.bf16.gmra.mxu3 %v688_v56  ;;  %1026 = vmatmul.bf16.gmra.mxu0 %v688_v56 }
 0x117   : > { %v590_v58 = vpop.f32.mrf.mxu0  ;;  %1075 = vmatmul.bf16.gmra.mxu1 %v2941_v57 }
 0x118   : > { %v639_v61 = vpop.f32.mrf.mxu1  ;;  %v591_v63 = vadd.f32 %v590_v58, %v2845_v60 }
 0x119   : > { %v640_v62 = vadd.f32 %v639_v61, %v2843_v59 }
 0x11a   : > { %v672_v6 = vmax.f32 %v591_v63, 0.0  ;;  %v3035_v63 = vperm.slane %v724_v40, 0 }
 0x11b   : > { %v673_v4 = vmax.f32 %v640_v62, 0.0 }
 0x11f   : > { %v592_v1 = vpop.f32.mrf.mxu0 }
 0x120   : > { %v593_v2 = vadd.f32 %v592_v1, %v2845_v60  ;;  %v641_v3 = vpop.f32.mrf.mxu1  ;;  %v2299_v60 = vld [vmem:[%s3250_s5 + $0x70] sm:$0xff] }
 0x121   : > { %v642_v5 = vadd.f32 %v641_v3, %v2843_v59  ;;  %1316 = vmatpush.bf16.msra.mxu3 %v2299_v60  ;;  %v2298_v59 = vld [vmem:[%s3250_s5 + $0x68] sm:$0xff] }
 0x122   : > { %v674_v7 = vmax.f32 %v593_v2, 0.0 }
 0x123   : > { %v675_v9 = vmax.f32 %v642_v5, 0.0 }
 0x124   : > { %v690_v10 = vpack.c.bf16 %v674_v7, %v672_v6 }
 0x125   : > { %v691_v11 = vpack.c.bf16 %v675_v9, %v673_v4  ;;  %1317 = vmatpush.bf16.msra.mxu3 %v2298_v59  ;;  %v2308_v4 = vld [vmem:[%s3252_s7 + $0x38] sm:$0xff] }
 0x126   : > { %933 = vmatmul.bf16.gmra.mxu3 %v690_v10  ;;  %1031 = vmatmul.bf16.gmra.mxu0 %v690_v10 }
 0x127   : > { %1080 = vmatmul.bf16.gmra.mxu1 %v691_v11  ;;  %1456 = vmatpush.bf16.msra.mxu0 %v2308_v4 }
 0x133   : > { %v997_v18 = vpop.f32.mrf.mxu0 }
 0x134   : > { %v1046_v19 = vpop.f32.mrf.mxu1  ;;  %v998_v47 = vadd.f32 %v997_v18, %v3026_v42 }
 0x136   : > { %947 = vmatmul.bf16.vlgmr.msrb.gmra.mxu3 %v2851_v8  ;;  %v2297_v8 = vld [vmem:[%s3250_s5 + $0x60] sm:$0xff]  ;;  %v1047_v50 = vadd.f32 %v1046_v19, %v998_v47 }
 0x137   : > { %1318 = vmatpush.bf16.msra.mxu3 %v2297_v8 }
 0x138   : > { %v1087_v55 = vmax.f32 %v1047_v50, 0.0 }
 0x139   : > { %v899_v51 = vpop.f32.mrf.mxu2 }
 0x13a   : > { %v900_v5 = vadd.f32 %v899_v51, %v3035_v63 }
 0x13b   : > { %v999_v22 = vpop.f32.mrf.mxu0 }
 0x13c   : > { %v1048_v25 = vpop.f32.mrf.mxu1  ;;  %v1000_v44 = vadd.f32 %v999_v22, %v3026_v42 }
 0x13e   : > { %v1049_v49 = vadd.f32 %v1048_v25, %v1000_v44 }
 0x140   : > { %v1089_v52 = vmax.f32 %v1049_v49, 0.0 }
 0x141   : > { %v901_v61 = vpop.f32.mrf.mxu2 }
 0x142   : > { %v1119_v56 = vpack.c.bf16 %v1089_v52, %v1087_v55  ;;  %v902_v9 = vadd.f32 %v901_v61, %v3035_v63 }
 0x143   : > { %v1002_v31 = vpop.f32.mrf.mxu0 }
 0x144   : > { %v1051_v33 = vpop.f32.mrf.mxu1  ;;  %v1003_v1 = vadd.f32 %v1002_v31, %v3026_v42 }
 0x146   : > { %952 = vmatmul.bf16.gmra.mxu3 %v2870_v28  ;;  %v2296_v28 = vld [vmem:[%s3250_s5 + $0x58] sm:$0xff]  ;;  %v1052_v6 = vadd.f32 %v1051_v33, %v1003_v1 }
 0x147   : > { %1319 = vmatpush.bf16.msra.mxu3 %v2296_v28 }
 0x148   : > { %v1091_v60 = vmax.f32 %v1052_v6, 0.0 }
 0x149   : > { %v904_v8 = vpop.f32.mrf.mxu2 }
 0x14a   : > { %v905_v31 = vadd.f32 %v904_v8, %v3035_v63 }
 0x14b   : > { %1320 = vmatpush.bf16.msra.mxu3 %v2295_v17  ;;  %v1004_v36 = vpop.f32.mrf.mxu0 }
 0x14c   : > { %v1053_v38 = vpop.f32.mrf.mxu1  ;;  %v1005_v58 = vadd.f32 %v1004_v36, %v3026_v42 }
 0x14e   : > { %v1054_v3 = vadd.f32 %v1053_v38, %v1005_v58 }
 0x150   : > { %v1093_v10 = vmax.f32 %v1054_v3, 0.0 }
 0x151   : > { %v906_v30 = vpop.f32.mrf.mxu2 }
 0x152   : > { %v1121_v18 = vpack.c.bf16 %v1093_v10, %v1091_v60  ;;  %v907_v35 = vadd.f32 %v906_v30, %v3035_v63 }
 0x153   : > { %v1007_v43 = vpop.f32.mrf.mxu0 }
 0x154   : > { %v1056_v48 = vpop.f32.mrf.mxu1  ;;  %v1008_v25 = vadd.f32 %v1007_v43, %v3026_v42 }
 0x156   : > { %957 = vmatmul.bf16.gmra.mxu3 %v2883_v45  ;;  %v1057_v32 = vadd.f32 %v1056_v48, %v1008_v25 }
 0x158   : > { %v1095_v40 = vmax.f32 %v1057_v32, 0.0 }
 0x159   : > { %v2960_v13 = vpop.f32.mrf.mxu3 }
 0x15a   : > { %v910_v58 = vadd.f32 %v2960_v13, %v3035_v63 }
 0x15b   : > { %v1009_v53 = vpop.f32.mrf.mxu0 }
 0x15c   : > { %v1010_v22 = vadd.f32 %v1009_v53, %v3026_v42 }
 0x161   : > { %v2965_v14 = vpop.f32.mrf.mxu3 }
 0x163   : > { %v1012_v2 = vpop.f32.mrf.mxu0 }
 0x164   : > { %v1013_v53 = vadd.f32 %v1012_v2, %v3026_v42 }
 0x166   : > { %962 = vmatmul.bf16.gmra.mxu3 %v2896_v0 }
 0x169   : > { %v2968_v15 = vpop.f32.mrf.mxu3 }
 0x16b   : > { %v1014_v19 = vpop.f32.mrf.mxu0 }
 0x16c   : > { %v1015_v51 = vadd.f32 %v1014_v19, %v3026_v42 }
 0x171   : > { %v2973_v16 = vpop.f32.mrf.mxu3 }
 0x172   : > { %v917_v19 = vadd.f32 %v2973_v16, %v3035_v63 }
 0x173   : > { %v1017_v33 = vpop.f32.mrf.mxu0 }
 0x176   : > { %967 = vmatmul.bf16.gmra.mxu3 %v2915_v21  ;;  %v2294_v21 = vld [vmem:[%s3250_s5 + $0x48] sm:$0xff] }
 0x177   : > { %1321 = vmatpush.bf16.msra.mxu3 %v2294_v21 }
 0x179   : > { %v2976_v45 = vpop.f32.mrf.mxu3 }
 0x17b   : > { %1322 = vmatpush.bf16.msra.mxu3 %v2293_v29  ;;  %v2307_v29 = vld [vmem:[%s3252_s7 + $0x30] sm:$0xff]  ;;  %v1019_v52 = vpop.f32.mrf.mxu0 }
 0x17c   : > { %1457 = vmatpush.bf16.msra.mxu0 %v2307_v29 }
 0x181   : > { %v2981_v0 = vpop.f32.mrf.mxu3 }
 0x183   : > { %v1022_v2 = vpop.f32.mrf.mxu0 }
 0x186   : > { %972 = vmatmul.bf16.gmra.mxu3 %v2928_v39 }
 0x189   : > { %v2987_v23 = vpop.f32.mrf.mxu3 }
 0x191   : > { %v2998_v27 = vpop.f32.mrf.mxu3 }
 0x196   : > { %977 = vmatmul.bf16.gmra.mxu3 %v2941_v57  ;;  %v1058_v57 = vpop.f32.mrf.mxu1 }
 0x197   : > { %v1059_v26 = vadd.f32 %v1058_v57, %v1010_v22 }
 0x199   : > { %v3010_v34 = vpop.f32.mrf.mxu3  ;;  %v1097_v36 = vmax.f32 %v1059_v26, 0.0 }
 0x19b   : > { %v1123_v49 = vpack.c.bf16 %v1097_v36, %v1095_v40  ;;  %v1023_v36 = vadd.f32 %v1022_v2, %v3026_v42  ;;  %v920_v40 = vadd.f32 %v2976_v45, %v3035_v63 }
 0x19e   : > { %v1061_v7 = vpop.f32.mrf.mxu1 }
 0x19f   : > { %v1062_v61 = vadd.f32 %v1061_v7, %v1013_v53  ;;  %v1018_v7 = vadd.f32 %v1017_v33, %v3026_v42 }
 0x1a1   : > { %v3018_v39 = vpop.f32.mrf.mxu3 }
 0x1a6   : > { %982 = vmatmul.bf16.gmra.mxu3 %v691_v11  ;;  %v1063_v21 = vpop.f32.mrf.mxu1 }
 0x1a7   : > { %v1064_v55 = vadd.f32 %v1063_v21, %v1015_v51 }
 0x1a9   : > { %v3029_v46 = vpop.f32.mrf.mxu3  ;;  %v1101_v1 = vmax.f32 %v1064_v55, 0.0 }
 0x1ae   : > { %v1066_v44 = vpop.f32.mrf.mxu1 }
 0x1b1   : > { %v3032_v54 = vpop.f32.mrf.mxu3 }
 0x1b6   : > { %1323 = vmatmul.bf16.vlgmr.msra.gmra.mxu3 %v1119_v56  ;;  %v2306_v56 = vld [vmem:[%s3252_s7 + $0x28] sm:$0xff]  ;;  %v1068_v57 = vpop.f32.mrf.mxu1 }
 0x1b7   : > { %1458 = vmatpush.bf16.msra.mxu0 %v2306_v56 }
 0x1b9   : > { %v948_v62 = vpop.f32.mrf.mxu3 }
 0x1ba   : > { %v949_v11 = vadd.f32 %v948_v62, %v900_v5  ;;  %v912_v62 = vadd.f32 %v2965_v14, %v3035_v63  ;;  %v1099_v5 = vmax.f32 %v1062_v61, 0.0  ;;  %v2305_v14 = vld [vmem:[%s3252_s7 + $0x20] sm:$0xff] }
 0x1bb   : > { %1459 = vmatpush.bf16.msra.mxu0 %v2305_v14 }
 0x1bc   : > { %v1086_v28 = vmax.f32 %v949_v11, 0.0  ;;  %v1125_v11 = vpack.c.bf16 %v1101_v1, %v1099_v5  ;;  %v2303_v1 = vld [vmem:[%s3252_s7 + $0x10] sm:$0xff] }
 0x1be   : > { %v1071_v60 = vpop.f32.mrf.mxu1 }
 0x1c1   : > { %v950_v12 = vpop.f32.mrf.mxu3 }
 0x1c2   : > { %v951_v59 = vadd.f32 %v950_v12, %v902_v9 }
 0x1c4   : > { %v1088_v17 = vmax.f32 %v951_v59, 0.0  ;;  %v1020_v59 = vadd.f32 %v1019_v52, %v3026_v42 }
 0x1c6   : > { %1328 = vmatmul.bf16.gmra.mxu3 %v1121_v18  ;;  %v1118_v20 = vpack.c.bf16 %v1088_v17, %v1086_v28  ;;  %v1069_v8 = vadd.f32 %v1068_v57, %v1020_v59  ;;  %v1024_v28 = vpop.f32.mrf.mxu0  ;;  %v915_v17 = vadd.f32 %v2968_v15, %v3035_v63  ;;  %v1067_v18 = vadd.f32 %v1066_v44, %v1018_v7  ;;  %v1073_v21 = vpop.f32.mrf.mxu1 }
 0x1c7   : > { %v922_v44 = vadd.f32 %v2981_v0, %v3035_v63 }
 0x1c8   : > { %1274 = vmatmul.bf16.vlgmr.msrb.gmra.mxu2 %v1118_v20  ;;  %v1105_v20 = vmax.f32 %v1069_v8, 0.0  ;;  %v1103_v25 = vmax.f32 %v1067_v18, 0.0 }
 0x1c9   : > { %v953_v24 = vpop.f32.mrf.mxu3 }
 0x1ca   : > { %v954_v37 = vadd.f32 %v953_v24, %v905_v31  ;;  %v1127_v29 = vpack.c.bf16 %v1105_v20, %v1103_v25 }
 0x1cc   : > { %v1090_v43 = vmax.f32 %v954_v37, 0.0 }
 0x1ce   : > { %v1027_v33 = vpop.f32.mrf.mxu0  ;;  %v1076_v37 = vpop.f32.mrf.mxu1 }
 0x1cf   : > { %v1028_v61 = vadd.f32 %v1027_v33, %v3026_v42 }
 0x1d1   : > { %v955_v38 = vpop.f32.mrf.mxu3 }
 0x1d2   : > { %v956_v41 = vadd.f32 %v955_v38, %v907_v35  ;;  %v1025_v35 = vadd.f32 %v1024_v28, %v3026_v42  ;;  %v2304_v38 = vld [vmem:[%s3252_s7 + $0x18] sm:$0xff] }
 0x1d3   : > { %1460 = vmatpush.bf16.msra.mxu0 %v2304_v38 }
 0x1d4   : > { %v1092_v47 = vmax.f32 %v956_v41, 0.0  ;;  %v1074_v16 = vadd.f32 %v1073_v21, %v1025_v35  ;;  %v1072_v41 = vadd.f32 %v1071_v60, %v1023_v36  ;;  %v935_v35 = vadd.f32 %v3029_v46, %v3035_v63  ;;  %v2316_v46 = vld [vmem:[%s3254_s9 + $0x38] sm:$0xff] }
 0x1d5   : > { %1597 = vmatpush.bf16.msra.mxu1 %v2316_v46 }
 0x1d6   : > { %1333 = vmatmul.bf16.gmra.mxu3 %v1123_v49  ;;  %v1120_v50 = vpack.c.bf16 %v1092_v47, %v1090_v43  ;;  %v1109_v43 = vmax.f32 %v1074_v16, 0.0  ;;  %v1029_v49 = vpop.f32.mrf.mxu0  ;;  %v1107_v51 = vmax.f32 %v1072_v41, 0.0  ;;  %v1078_v56 = vpop.f32.mrf.mxu1 }
 0x1d7   : > { %1461 = vmatpush.bf16.msra.mxu0 %v2303_v1 }
 0x1d8   : > { %1279 = vmatmul.bf16.gmra.mxu2 %v1120_v50 }
 0x1d9   : > { %v958_v48 = vpop.f32.mrf.mxu3 }
 0x1da   : > { %v959_v3 = vadd.f32 %v958_v48, %v910_v58  ;;  %v1129_v48 = vpack.c.bf16 %v1109_v43, %v1107_v51  ;;  %v1030_v58 = vadd.f32 %v1029_v49, %v3026_v42 }
 0x1dc   : > { %v1094_v9 = vmax.f32 %v959_v3, 0.0  ;;  %v1079_v0 = vadd.f32 %v1078_v56, %v1030_v58  ;;  %v925_v3 = vadd.f32 %v2987_v23, %v3035_v63  ;;  %v2315_v56 = vld [vmem:[%s3254_s9 + $0x30] sm:$0xff] }
 0x1dd   : > { %1598 = vmatpush.bf16.msra.mxu1 %v2315_v56 }
 0x1de   : > { %v1081_v5 = vpop.f32.mrf.mxu1  ;;  %v1113_v2 = vmax.f32 %v1079_v0, 0.0 }
 0x1e1   : > { %v960_v4 = vpop.f32.mrf.mxu3 }
 0x1e2   : > { %v961_v6 = vadd.f32 %v960_v4, %v912_v62  ;;  %v1032_v62 = vpop.f32.mrf.mxu0  ;;  %v1077_v4 = vadd.f32 %v1076_v37, %v1028_v61 }
 0x1e4   : > { %v1096_v10 = vmax.f32 %v961_v6, 0.0  ;;  %v927_v6 = vadd.f32 %v2998_v27, %v3035_v63  ;;  %v2302_v27 = vld [vmem:[%s3252_s7 + $0x8] sm:$0xff] }
 0x1e5   : > { %1462 = vmatpush.bf16.msra.mxu0 %v2302_v27 }
 0x1e6   : > { %1338 = vmatmul.bf16.gmra.mxu3 %v1125_v11  ;;  %v1122_v12 = vpack.c.bf16 %v1096_v10, %v1094_v9  ;;  %v1111_v11 = vmax.f32 %v1077_v4, 0.0  ;;  %v1083_v23 = vpop.f32.mrf.mxu1 }
 0x1e8   : > { %1284 = vmatmul.bf16.gmra.mxu2 %v1122_v12  ;;  %v1131_v60 = vpack.c.bf16 %v1113_v2, %v1111_v11  ;;  %v2314_v2 = vld [vmem:[%s3254_s9 + $0x28] sm:$0xff] }
 0x1e9   : > { %v963_v13 = vpop.f32.mrf.mxu3  ;;  %1599 = vmatpush.bf16.msra.mxu1 %v2314_v2 }
 0x1ea   : > { %v964_v22 = vadd.f32 %v963_v13, %v915_v17  ;;  %v1034_v7 = vpop.f32.mrf.mxu0  ;;  %v1033_v17 = vadd.f32 %v1032_v62, %v3026_v42 }
 0x1eb   : > { %v1035_v14 = vadd.f32 %v1034_v7, %v3026_v42 }
 0x1ec   : > { %v1098_v30 = vmax.f32 %v964_v22, 0.0  ;;  %v1082_v20 = vadd.f32 %v1081_v5, %v1033_v17  ;;  %v932_v22 = vadd.f32 %v3018_v39, %v3035_v63  ;;  %v2301_v39 = vld [vmem:[%s3252_s7] sm:$0xff] }
 0x1ed   : > { %v1084_v18 = vadd.f32 %v1083_v23, %v1035_v14  ;;  %1463 = vmatpush.bf16.msra.mxu0 %v2301_v39 }
 0x1ef   : > { %v1117_v21 = vmax.f32 %v1084_v18, 0.0 }
 0x1f1   : > { %v965_v24 = vpop.f32.mrf.mxu3 }
 0x1f2   : > { %v966_v26 = vadd.f32 %v965_v24, %v917_v19  ;;  %v930_v19 = vadd.f32 %v3010_v34, %v3035_v63  ;;  %v937_v34 = vadd.f32 %v3032_v54, %v3035_v63  ;;  %v3108_v63 = vld [vmem:[%s3251_s6] ss:$0 sm:$0xff] }
 0x1f4   : > { %v1100_v31 = vmax.f32 %v966_v26, 0.0  ;;  %v1115_v26 = vmax.f32 %v1082_v20, 0.0 }
 0x1f6   : > { %1343 = vmatmul.bf16.gmra.mxu3 %v1127_v29  ;;  %v1124_v32 = vpack.c.bf16 %v1100_v31, %v1098_v30  ;;  %v1133_v30 = vpack.c.bf16 %v1117_v21, %v1115_v26 }
 0x1f8   : > { %1289 = vmatmul.bf16.gmra.mxu2 %v1124_v32 }
 0x1f9   : > { %v968_v15 = vpop.f32.mrf.mxu3 }
 0x1fa   : > { %v969_v47 = vadd.f32 %v968_v15, %v920_v40 }
 0x1fc   : > { %v1102_v53 = vmax.f32 %v969_v47, 0.0 }
 0x201   : > { %v970_v50 = vpop.f32.mrf.mxu3 }
 0x202   : > { %v971_v52 = vadd.f32 %v970_v50, %v922_v44 }
 0x204   : > { %v1104_v55 = vmax.f32 %v971_v52, 0.0 }
 0x206   : > { %1348 = vmatmul.bf16.gmra.mxu3 %v1129_v48  ;;  %v1126_v57 = vpack.c.bf16 %v1104_v55, %v1102_v53 }
 0x208   : > { %1294 = vmatmul.bf16.gmra.mxu2 %v1126_v57 }
 0x209   : > { %v973_v45 = vpop.f32.mrf.mxu3 }
 0x20a   : > { %v974_v9 = vadd.f32 %v973_v45, %v925_v3 }
 0x20c   : > { %v1106_v59 = vmax.f32 %v974_v9, 0.0 }
 0x211   : > { %v975_v10 = vpop.f32.mrf.mxu3 }
 0x212   : > { %v976_v12 = vadd.f32 %v975_v10, %v927_v6 }
 0x214   : > { %v1108_v13 = vmax.f32 %v976_v12, 0.0 }
 0x216   : > { %1353 = vmatmul.bf16.gmra.mxu3 %v1131_v60  ;;  %v1128_v8 = vpack.c.bf16 %v1108_v13, %v1106_v59 }
 0x218   : > { %1299 = vmatmul.bf16.gmra.mxu2 %v1128_v8 }
 0x219   : > { %v978_v28 = vpop.f32.mrf.mxu3 }
 0x21a   : > { %v979_v24 = vadd.f32 %v978_v28, %v930_v19  ;;  %v2313_v28 = vld [vmem:[%s3254_s9 + $0x20] sm:$0xff] }
 0x21b   : > { %1600 = vmatpush.bf16.msra.mxu1 %v2313_v28 }
 0x21c   : > { %v1110_v31 = vmax.f32 %v979_v24, 0.0 }
 0x221   : > { %v980_v25 = vpop.f32.mrf.mxu3 }
 0x222   : > { %v981_v29 = vadd.f32 %v980_v25, %v932_v22 }
 0x224   : > { %v1112_v32 = vmax.f32 %v981_v29, 0.0  ;;  %v2312_v29 = vld [vmem:[%s3254_s9 + $0x18] sm:$0xff] }
 0x225   : > { %1601 = vmatpush.bf16.msra.mxu1 %v2312_v29 }
 0x226   : > { %1358 = vmatmul.bf16.gmra.mxu3 %v1133_v30  ;;  %v1130_v33 = vpack.c.bf16 %v1112_v32, %v1110_v31 }
 0x228   : > { %1304 = vmatmul.bf16.gmra.mxu2 %v1130_v33 }
 0x229   : > { %v983_v42 = vpop.f32.mrf.mxu3 }
 0x22a   : > { %v984_v15 = vadd.f32 %v983_v42, %v935_v35 }
 0x22c   : > { %v1114_v16 = vmax.f32 %v984_v15, 0.0 }
 0x231   : > { %v985_v36 = vpop.f32.mrf.mxu3 }
 0x232   : > { %v986_v37 = vadd.f32 %v985_v36, %v937_v34 }
 0x234   : > { %v1116_v38 = vmax.f32 %v986_v37, 0.0 }
 0x236   : > { %v1132_v40 = vpack.c.bf16 %v1116_v38, %v1114_v16  ;;  %v2311_v16 = vld [vmem:[%s3254_s9 + $0x10] sm:$0xff] }
 0x237   : > { %1602 = vmatpush.bf16.msra.mxu1 %v2311_v16 }
 0x238   : > { %1309 = vmatmul.bf16.gmra.mxu2 %v1132_v40 }
 0x239   : > { %v1324_v41 = vpop.f32.mrf.mxu3 }
 0x241   : > { %v1326_v44 = vpop.f32.mrf.mxu3 }
 0x249   : > { %v1329_v43 = vpop.f32.mrf.mxu3 }
 0x24b   : > { %v1275_v54 = vpop.f32.mrf.mxu2 }
 0x24c   : > { %v1276_v47 = vadd.f32 %v3108_v63, %v1275_v54 }
 0x24e   : > { %v1325_v51 = vadd.f32 %v1324_v41, %v1276_v47 }
 0x250   : > { %v1364_v53 = vmax.f32 %v1325_v51, 0.0 }
 0x251   : > { %v1331_v49 = vpop.f32.mrf.mxu3 }
 0x253   : > { %v1277_v50 = vpop.f32.mrf.mxu2 }
 0x254   : > { %v1278_v52 = vadd.f32 %v3108_v63, %v1277_v50 }
 0x256   : > { %v1327_v48 = vadd.f32 %v1326_v44, %v1278_v52  ;;  %v2310_v52 = vld [vmem:[%s3254_s9 + $0x8] sm:$0xff] }
 0x257   : > { %1603 = vmatpush.bf16.msra.mxu1 %v2310_v52 }
 0x258   : > { %v1365_v55 = vmax.f32 %v1327_v48, 0.0 }
 0x259   : > { %v1334_v57 = vpop.f32.mrf.mxu3 }
 0x25a   : > { %v1380_v58 = vpack.c.bf16 %v1365_v55, %v1364_v53  ;;  %v2309_v55 = vld [vmem:[%s3254_s9] sm:$0xff] }
 0x25b   : > { %v1280_v45 = vpop.f32.mrf.mxu2  ;;  %1604 = vmatpush.bf16.msra.mxu1 %v2309_v55 }
 0x25c   : > { %1464 = vmatmul.bf16.vlgmr.msra.gmra.mxu0 %v1380_v58  ;;  %v1281_v61 = vadd.f32 %v3108_v63, %v1280_v45 }
 0x25e   : > { %v1330_v1 = vadd.f32 %v1329_v43, %v1281_v61 }
 0x260   : > { %v1366_v5 = vmax.f32 %v1330_v1, 0.0 }
 0x261   : > { %v1336_v62 = vpop.f32.mrf.mxu3 }
 0x263   : > { %v1282_v0 = vpop.f32.mrf.mxu2 }
 0x264   : > { %v1283_v3 = vadd.f32 %v3108_v63, %v1282_v0 }
 0x266   : > { %v1332_v4 = vadd.f32 %v1331_v49, %v1283_v3 }
 0x268   : > { %v1367_v6 = vmax.f32 %v1332_v4, 0.0 }
 0x269   : > { %v1339_v10 = vpop.f32.mrf.mxu3 }
 0x26a   : > { %v1381_v9 = vpack.c.bf16 %v1367_v6, %v1366_v5 }
 0x26b   : > { %v1285_v11 = vpop.f32.mrf.mxu2 }
 0x26c   : > { %1469 = vmatmul.bf16.gmra.mxu0 %v1381_v9  ;;  %v1286_v12 = vadd.f32 %v3108_v63, %v1285_v11 }
 0x26e   : > { %v1335_v59 = vadd.f32 %v1334_v57, %v1286_v12 }
 0x270   : > { %v1368_v14 = vmax.f32 %v1335_v59, 0.0 }
 0x271   : > { %v1341_v7 = vpop.f32.mrf.mxu3 }
 0x273   : > { %v1287_v60 = vpop.f32.mrf.mxu2 }
 0x274   : > { %v1288_v13 = vadd.f32 %v3108_v63, %v1287_v60 }
 0x276   : > { %v1337_v8 = vadd.f32 %v1336_v62, %v1288_v13 }
 0x278   : > { %v1369_v23 = vmax.f32 %v1337_v8, 0.0 }
 0x279   : > { %v1344_v18 = vpop.f32.mrf.mxu3 }
 0x27a   : > { %v1382_v27 = vpack.c.bf16 %v1369_v23, %v1368_v14  ;;  %v3153_v14 = vld [vmem:[%s3253_s8] ss:$0 sm:$0xff] }
 0x27b   : > { %v1290_v17 = vpop.f32.mrf.mxu2 }
 0x27c   : > { %1474 = vmatmul.bf16.gmra.mxu0 %v1382_v27  ;;  %v1291_v19 = vadd.f32 %v3108_v63, %v1290_v17 }
 0x27e   : > { %v1340_v22 = vadd.f32 %v1339_v10, %v1291_v19  ;;  %v2323_v19 = vld [vmem:[%s3256_s11 + $0x30] sm:$0xff] }
 0x280   : > { %v1370_v25 = vmax.f32 %v1340_v22, 0.0 }
 0x281   : > { %v1346_v30 = vpop.f32.mrf.mxu3 }
 0x283   : > { %v1292_v20 = vpop.f32.mrf.mxu2 }
 0x284   : > { %v1293_v21 = vadd.f32 %v3108_v63, %v1292_v20 }
 0x286   : > { %v1342_v24 = vadd.f32 %v1341_v7, %v1293_v21  ;;  %v2324_v7 = vld [vmem:[%s3256_s11 + $0x38] sm:$0xff] }
 0x287   : > { %1738 = vmatpush.bf16.msra.mxu2 %v2324_v7 }
 0x288   : > { %v1371_v26 = vmax.f32 %v1342_v24, 0.0 }
 0x289   : > { %v1349_v42 = vpop.f32.mrf.mxu3 }
 0x28a   : > { %v1383_v31 = vpack.c.bf16 %v1371_v26, %v1370_v25 }
 0x28b   : > { %v1295_v32 = vpop.f32.mrf.mxu2  ;;  %1739 = vmatpush.bf16.msra.mxu2 %v2323_v19 }
 0x28c   : > { %1479 = vmatmul.bf16.gmra.mxu0 %v1383_v31  ;;  %v1296_v33 = vadd.f32 %v3108_v63, %v1295_v32 }
 0x28e   : > { %v1345_v34 = vadd.f32 %v1344_v18, %v1296_v33 }
 0x290   : > { %v1372_v36 = vmax.f32 %v1345_v34, 0.0 }
 0x291   : > { %v1351_v41 = vpop.f32.mrf.mxu3 }
 0x293   : > { %v1297_v35 = vpop.f32.mrf.mxu2 }
 0x294   : > { %v1298_v15 = vadd.f32 %v3108_v63, %v1297_v35 }
 0x296   : > { %v1347_v39 = vadd.f32 %v1346_v30, %v1298_v15  ;;  %v2322_v30 = vld [vmem:[%s3256_s11 + $0x28] sm:$0xff] }
 0x297   : > { %1740 = vmatpush.bf16.msra.mxu2 %v2322_v30 }
 0x298   : > { %v1373_v37 = vmax.f32 %v1347_v39, 0.0  ;;  %v2321_v39 = vld [vmem:[%s3256_s11 + $0x20] sm:$0xff] }
 0x299   : > { %v1354_v49 = vpop.f32.mrf.mxu3 }
 0x29a   : > { %v1384_v38 = vpack.c.bf16 %v1373_v37, %v1372_v36 }
 0x29b   : > { %v1300_v40 = vpop.f32.mrf.mxu2  ;;  %1741 = vmatpush.bf16.msra.mxu2 %v2321_v39 }
 0x29c   : > { %1484 = vmatmul.bf16.gmra.mxu0 %v1384_v38  ;;  %v1301_v44 = vadd.f32 %v3108_v63, %v1300_v40 }
 0x29e   : > { %v1350_v43 = vadd.f32 %v1349_v42, %v1301_v44 }
 0x2a0   : > { %v1374_v50 = vmax.f32 %v1350_v43, 0.0 }
 0x2a1   : > { %v1356_v57 = vpop.f32.mrf.mxu3 }
 0x2a3   : > { %v1302_v46 = vpop.f32.mrf.mxu2 }
 0x2a4   : > { %v1303_v54 = vadd.f32 %v3108_v63, %v1302_v46  ;;  %v2320_v46 = vld [vmem:[%s3256_s11 + $0x18] sm:$0xff] }
 0x2a5   : > { %1742 = vmatpush.bf16.msra.mxu2 %v2320_v46 }
 0x2a6   : > { %v1352_v47 = vadd.f32 %v1351_v41, %v1303_v54 }
 0x2a8   : > { %v1375_v51 = vmax.f32 %v1352_v47, 0.0 }
 0x2a9   : > { %v1359_v4 = vpop.f32.mrf.mxu3 }
 0x2aa   : > { %v1385_v48 = vpack.c.bf16 %v1375_v51, %v1374_v50 }
 0x2ab   : > { %v1305_v53 = vpop.f32.mrf.mxu2 }
 0x2ac   : > { %1489 = vmatmul.bf16.gmra.mxu0 %v1385_v48  ;;  %v1306_v56 = vadd.f32 %v3108_v63, %v1305_v53  ;;  %v2319_v48 = vld [vmem:[%s3256_s11 + $0x10] sm:$0xff] }
 0x2ad   : > { %1743 = vmatpush.bf16.msra.mxu2 %v2319_v48 }
 0x2ae   : > { %v1355_v45 = vadd.f32 %v1354_v49, %v1306_v56 }
 0x2b0   : > { %v1376_v0 = vmax.f32 %v1355_v45, 0.0 }
 0x2b1   : > { %v1361_v11 = vpop.f32.mrf.mxu3 }
 0x2b3   : > { %v1307_v58 = vpop.f32.mrf.mxu2 }
 0x2b4   : > { %v1308_v61 = vadd.f32 %v3108_v63, %v1307_v58 }
 0x2b6   : > { %v1357_v62 = vadd.f32 %v1356_v57, %v1308_v61 }
 0x2b8   : > { %v1377_v1 = vmax.f32 %v1357_v62, 0.0  ;;  %v2318_v62 = vld [vmem:[%s3256_s11 + $0x8] sm:$0xff] }
 0x2b9   : > { %1744 = vmatpush.bf16.msra.mxu2 %v2318_v62 }
 0x2ba   : > { %v1386_v3 = vpack.c.bf16 %v1377_v1, %v1376_v0  ;;  %v2317_v0 = vld [vmem:[%s3256_s11] sm:$0xff] }
 0x2bb   : > { %v1310_v5 = vpop.f32.mrf.mxu2 }
 0x2bc   : > { %1494 = vmatmul.bf16.gmra.mxu0 %v1386_v3  ;;  %v1311_v6 = vadd.f32 %v3108_v63, %v1310_v5 }
 0x2bd   : > { %1745 = vmatpush.bf16.msra.mxu2 %v2317_v0 }
 0x2be   : > { %v1360_v9 = vadd.f32 %v1359_v4, %v1311_v6 }
 0x2c0   : > { %v1378_v60 = vmax.f32 %v1360_v9, 0.0 }
 0x2c3   : > { %v1312_v2 = vpop.f32.mrf.mxu2 }
 0x2c4   : > { %v1313_v10 = vadd.f32 %v3108_v63, %v1312_v2 }
 0x2c6   : > { %v1362_v12 = vadd.f32 %v1361_v11, %v1313_v10 }
 0x2c8   : > { %v1379_v59 = vmax.f32 %v1362_v12, 0.0 }
 0x2ca   : > { %v1387_v13 = vpack.c.bf16 %v1379_v59, %v1378_v60 }
 0x2cc   : > { %1499 = vmatmul.bf16.gmra.mxu0 %v1387_v13 }
 0x2d9   : > { %v1465_v8 = vpop.f32.mrf.mxu0 }
 0x2da   : > { %v1466_v23 = vadd.f32 %v3153_v14, %v1465_v8 }
 0x2dc   : > { %v1505_v27 = vmax.f32 %v1466_v23, 0.0  ;;  %v2424_v23 = vld [vmem:[%s3255_s10] ss:$0 sm:$0xff] }
 0x2e1   : > { %v1467_v63 = vpop.f32.mrf.mxu0 }
 0x2e2   : > { %v1468_v28 = vadd.f32 %v3153_v14, %v1467_v63 }
 0x2e4   : > { %v1506_v17 = vmax.f32 %v1468_v28, 0.0 }
 0x2e6   : > { %v1521_v18 = vpack.c.bf16 %v1506_v17, %v1505_v27 }
 0x2e8   : > { %1605 = vmatmul.bf16.vlgmr.msra.gmra.mxu1 %v1521_v18 }
 0x2e9   : > { %v1470_v20 = vpop.f32.mrf.mxu0 }
 0x2ea   : > { %v1471_v22 = vadd.f32 %v3153_v14, %v1470_v20 }
 0x2ec   : > { %v1507_v25 = vmax.f32 %v1471_v22, 0.0 }
 0x2f1   : > { %v1472_v21 = vpop.f32.mrf.mxu0 }
 0x2f2   : > { %v1473_v24 = vadd.f32 %v3153_v14, %v1472_v21 }
 0x2f4   : > { %v1508_v26 = vmax.f32 %v1473_v24, 0.0 }
 0x2f6   : > { %v1522_v29 = vpack.c.bf16 %v1508_v26, %v1507_v25 }
 0x2f8   : > { %1610 = vmatmul.bf16.gmra.mxu1 %v1522_v29 }
 0x2f9   : > { %v1475_v31 = vpop.f32.mrf.mxu0 }
 0x2fa   : > { %v1476_v32 = vadd.f32 %v3153_v14, %v1475_v31 }
 0x2fc   : > { %v1509_v35 = vmax.f32 %v1476_v32, 0.0 }
 0x301   : > { %v1477_v33 = vpop.f32.mrf.mxu0 }
 0x302   : > { %v1478_v42 = vadd.f32 %v3153_v14, %v1477_v33 }
 0x304   : > { %v1510_v34 = vmax.f32 %v1478_v42, 0.0 }
 0x306   : > { %v1523_v15 = vpack.c.bf16 %v1510_v34, %v1509_v35 }
 0x308   : > { %1615 = vmatmul.bf16.gmra.mxu1 %v1523_v15 }
 0x309   : > { %v1480_v36 = vpop.f32.mrf.mxu0 }
 0x30a   : > { %v1481_v37 = vadd.f32 %v3153_v14, %v1480_v36 }
 0x30c   : > { %v1511_v40 = vmax.f32 %v1481_v37, 0.0 }
 0x311   : > { %v1482_v16 = vpop.f32.mrf.mxu0 }
 0x312   : > { %v1483_v38 = vadd.f32 %v3153_v14, %v1482_v16 }
 0x314   : > { %v1512_v41 = vmax.f32 %v1483_v38, 0.0 }
 0x316   : > { %v1524_v44 = vpack.c.bf16 %v1512_v41, %v1511_v40 }
 0x318   : > { %1620 = vmatmul.bf16.gmra.mxu1 %v1524_v44 }
 0x319   : > { %v1485_v43 = vpop.f32.mrf.mxu0 }
 0x31a   : > { %v1486_v54 = vadd.f32 %v3153_v14, %v1485_v43 }
 0x31c   : > { %v1513_v50 = vmax.f32 %v1486_v54, 0.0 }
 0x321   : > { %v1487_v47 = vpop.f32.mrf.mxu0 }
 0x322   : > { %v1488_v49 = vadd.f32 %v3153_v14, %v1487_v47 }
 0x324   : > { %v1514_v51 = vmax.f32 %v1488_v49, 0.0 }
 0x326   : > { %v1525_v52 = vpack.c.bf16 %v1514_v51, %v1513_v50 }
 0x328   : > { %1625 = vmatmul.bf16.gmra.mxu1 %v1525_v52 }
 0x329   : > { %v1490_v53 = vpop.f32.mrf.mxu0 }
 0x32a   : > { %v1491_v55 = vadd.f32 %v3153_v14, %v1490_v53 }
 0x32c   : > { %v1515_v58 = vmax.f32 %v1491_v55, 0.0 }
 0x331   : > { %v1492_v56 = vpop.f32.mrf.mxu0 }
 0x332   : > { %v1493_v57 = vadd.f32 %v3153_v14, %v1492_v56 }
 0x334   : > { %v1516_v45 = vmax.f32 %v1493_v57, 0.0 }
 0x336   : > { %v1526_v61 = vpack.c.bf16 %v1516_v45, %v1515_v58 }
 0x338   : > { %1630 = vmatmul.bf16.gmra.mxu1 %v1526_v61 }
 0x339   : > { %v1495_v1 = vpop.f32.mrf.mxu0 }
 0x33a   : > { %v1496_v3 = vadd.f32 %v3153_v14, %v1495_v1 }
 0x33c   : > { %v1517_v6 = vmax.f32 %v1496_v3, 0.0 }
 0x341   : > { %v1497_v4 = vpop.f32.mrf.mxu0 }
 0x342   : > { %v1498_v5 = vadd.f32 %v3153_v14, %v1497_v4 }
 0x344   : > { %v1518_v2 = vmax.f32 %v1498_v5, 0.0 }
 0x346   : > { %v1527_v9 = vpack.c.bf16 %v1518_v2, %v1517_v6 }
 0x348   : > { %1635 = vmatmul.bf16.gmra.mxu1 %v1527_v9 }
 0x349   : > { %v1500_v10 = vpop.f32.mrf.mxu0 }
 0x34a   : > { %v1501_v11 = vadd.f32 %v3153_v14, %v1500_v10 }
 0x34c   : > { %v1519_v59 = vmax.f32 %v1501_v11, 0.0  ;;  %v2425_v11 = vld [vmem:[%s3257_s12] ss:$0 sm:$0xff] }
 0x351   : > { %v1502_v12 = vpop.f32.mrf.mxu0 }
 0x352   : > { %v1503_v60 = vadd.f32 %v3153_v14, %v1502_v12 }
 0x354   : > { %v1520_v13 = vmax.f32 %v1503_v60, 0.0 }
 0x356   : > { %v1528_v7 = vpack.c.bf16 %v1520_v13, %v1519_v59 }
 0x358   : > { %1640 = vmatmul.bf16.gmra.mxu1 %v1528_v7 }
 0x365   : > { %v1606_v8 = vpop.f32.mrf.mxu1 }
 0x366   : > { %v1607_v63 = vadd.f32 %v2424_v23, %v1606_v8 }
 0x368   : > { %v1646_v17 = vmax.f32 %v1607_v63, 0.0 }
 0x36d   : > { %v1608_v28 = vpop.f32.mrf.mxu1 }
 0x36e   : > { %v1609_v27 = vadd.f32 %v2424_v23, %v1608_v28 }
 0x370   : > { %v1647_v18 = vmax.f32 %v1609_v27, 0.0 }
 0x372   : > { %v1662_v19 = vpack.c.bf16 %v1647_v18, %v1646_v17 }
 0x374   : > { %1746 = vmatmul.bf16.vlgmr.msra.gmra.mxu2 %v1662_v19 }
 0x375   : > { %v1611_v20 = vpop.f32.mrf.mxu1 }
 0x376   : > { %v1612_v22 = vadd.f32 %v2424_v23, %v1611_v20 }
 0x378   : > { %v1648_v24 = vmax.f32 %v1612_v22, 0.0 }
 0x37d   : > { %v1613_v21 = vpop.f32.mrf.mxu1 }
 0x37e   : > { %v1614_v14 = vadd.f32 %v2424_v23, %v1613_v21 }
 0x380   : > { %v1649_v25 = vmax.f32 %v1614_v14, 0.0 }
 0x382   : > { %v1663_v26 = vpack.c.bf16 %v1649_v25, %v1648_v24 }
 0x384   : > { %1751 = vmatmul.bf16.gmra.mxu2 %v1663_v26 }
 0x385   : > { %v1616_v29 = vpop.f32.mrf.mxu1 }
 0x386   : > { %v1617_v30 = vadd.f32 %v2424_v23, %v1616_v29 }
 0x388   : > { %v1650_v33 = vmax.f32 %v1617_v30, 0.0 }
 0x38d   : > { %v1618_v31 = vpop.f32.mrf.mxu1 }
 0x38e   : > { %v1619_v32 = vadd.f32 %v2424_v23, %v1618_v31 }
 0x390   : > { %v1651_v42 = vmax.f32 %v1619_v32, 0.0 }
 0x392   : > { %v1664_v35 = vpack.c.bf16 %v1651_v42, %v1650_v33 }
 0x394   : > { %1756 = vmatmul.bf16.gmra.mxu2 %v1664_v35 }
 0x395   : > { %v1621_v34 = vpop.f32.mrf.mxu1 }
 0x396   : > { %v1622_v15 = vadd.f32 %v2424_v23, %v1621_v34 }
 0x398   : > { %v1652_v37 = vmax.f32 %v1622_v15, 0.0 }
 0x39d   : > { %v1623_v39 = vpop.f32.mrf.mxu1 }
 0x39e   : > { %v1624_v36 = vadd.f32 %v2424_v23, %v1623_v39 }
 0x3a0   : > { %v1653_v16 = vmax.f32 %v1624_v36, 0.0 }
 0x3a2   : > { %v1665_v38 = vpack.c.bf16 %v1653_v16, %v1652_v37 }
 0x3a4   : > { %1761 = vmatmul.bf16.gmra.mxu2 %v1665_v38 }
 0x3a5   : > { %v1626_v40 = vpop.f32.mrf.mxu1 }
 0x3a6   : > { %v1627_v41 = vadd.f32 %v2424_v23, %v1626_v40 }
 0x3a8   : > { %v1654_v43 = vmax.f32 %v1627_v41, 0.0 }
 0x3ad   : > { %v1628_v44 = vpop.f32.mrf.mxu1 }
 0x3ae   : > { %v1629_v46 = vadd.f32 %v2424_v23, %v1628_v44 }
 0x3b0   : > { %v1655_v54 = vmax.f32 %v1629_v46, 0.0 }
 0x3b2   : > { %v1666_v47 = vpack.c.bf16 %v1655_v54, %v1654_v43 }
 0x3b4   : > { %1766 = vmatmul.bf16.gmra.mxu2 %v1666_v47 }
 0x3b5   : > { %v1631_v49 = vpop.f32.mrf.mxu1 }
 0x3b6   : > { %v1632_v50 = vadd.f32 %v2424_v23, %v1631_v49 }
 0x3b8   : > { %v1656_v48 = vmax.f32 %v1632_v50, 0.0 }
 0x3bd   : > { %v1633_v51 = vpop.f32.mrf.mxu1 }
 0x3be   : > { %v1634_v52 = vadd.f32 %v2424_v23, %v1633_v51 }
 0x3c0   : > { %v1657_v53 = vmax.f32 %v1634_v52, 0.0 }
 0x3c2   : > { %v1667_v55 = vpack.c.bf16 %v1657_v53, %v1656_v48 }
 0x3c4   : > { %1771 = vmatmul.bf16.gmra.mxu2 %v1667_v55 }
 0x3c5   : > { %v1636_v56 = vpop.f32.mrf.mxu1 }
 0x3c6   : > { %v1637_v57 = vadd.f32 %v2424_v23, %v1636_v56 }
 0x3c8   : > { %v1658_v61 = vmax.f32 %v1637_v57, 0.0 }
 0x3cd   : > { %v1638_v58 = vpop.f32.mrf.mxu1 }
 0x3ce   : > { %v1639_v45 = vadd.f32 %v2424_v23, %v1638_v58 }
 0x3d0   : > { %v1659_v62 = vmax.f32 %v1639_v45, 0.0 }
 0x3d2   : > { %v1668_v0 = vpack.c.bf16 %v1659_v62, %v1658_v61 }
 0x3d4   : > { %1776 = vmatmul.bf16.gmra.mxu2 %v1668_v0 }
 0x3d5   : > { %v1641_v1 = vpop.f32.mrf.mxu1 }
 0x3d6   : > { %v1642_v3 = vadd.f32 %v2424_v23, %v1641_v1 }
 0x3d8   : > { %v1660_v6 = vmax.f32 %v1642_v3, 0.0 }
 0x3dd   : > { %v1643_v4 = vpop.f32.mrf.mxu1 }
 0x3de   : > { %v1644_v5 = vadd.f32 %v2424_v23, %v1643_v4 }
 0x3e0   : > { %v1661_v2 = vmax.f32 %v1644_v5, 0.0 }
 0x3e2   : > { %v1669_v9 = vpack.c.bf16 %v1661_v2, %v1660_v6 }
 0x3e4   : > { %1781 = vmatmul.bf16.gmra.mxu2 %v1669_v9 }
 0x3f7   : > { %v1747_v10 = vpop.f32.mrf.mxu2 }
 0x3f8   : > { %v1748_v60 = vadd.f32 %v2425_v11, %v1747_v10 }
 0x3ff   : > { %v1749_v12 = vpop.f32.mrf.mxu2 }
 0x400   : > { %v1750_v59 = vadd.f32 %v2425_v11, %v1749_v12 }
 0x402   : > { %v2329_v13 = vpack.c.bf16 %v1750_v59, %v1748_v60 }
 0x404   : > { %2330 = vst [vmem:[%s3201_s23] sm:$0xff] %v2329_v13  }
 0x407   : > { %v1752_v7 = vpop.f32.mrf.mxu2 }
 0x408   : > { %v1753_v23 = vadd.f32 %v2425_v11, %v1752_v7 }
 0x40f   : > { %v1754_v8 = vpop.f32.mrf.mxu2 }
 0x410   : > { %v1755_v63 = vadd.f32 %v2425_v11, %v1754_v8 }
 0x412   : > { %v2334_v28 = vpack.c.bf16 %v1755_v63, %v1753_v23 }
 0x414   : > { %2366 = vst [vmem:[%s3201_s23 + $0x8] sm:$0xff] %v2334_v28  }
 0x417   : > { %v1757_v27 = vpop.f32.mrf.mxu2 }
 0x418   : > { %v1758_v18 = vadd.f32 %v2425_v11, %v1757_v27 }
 0x41f   : > { %v1759_v17 = vpop.f32.mrf.mxu2 }
 0x420   : > { %v1760_v19 = vadd.f32 %v2425_v11, %v1759_v17 }
 0x422   : > { %v2339_v20 = vpack.c.bf16 %v1760_v19, %v1758_v18 }
 0x424   : > { %2367 = vst [vmem:[%s3201_s23 + $0x10] sm:$0xff] %v2339_v20  }
 0x427   : > { %v1762_v22 = vpop.f32.mrf.mxu2 }
 0x428   : > { %v1763_v14 = vadd.f32 %v2425_v11, %v1762_v22 }
 0x42f   : > { %v1764_v21 = vpop.f32.mrf.mxu2 }
 0x430   : > { %v1765_v24 = vadd.f32 %v2425_v11, %v1764_v21 }
 0x432   : > { %v2344_v25 = vpack.c.bf16 %v1765_v24, %v1763_v14 }
 0x434   : > { %2368 = vst [vmem:[%s3201_s23 + $0x18] sm:$0xff] %v2344_v25  }
 0x437   : > { %v1767_v26 = vpop.f32.mrf.mxu2 }
 0x438   : > { %v1768_v30 = vadd.f32 %v2425_v11, %v1767_v26 }
 0x43f   : > { %v1769_v29 = vpop.f32.mrf.mxu2 }
 0x440   : > { %v1770_v31 = vadd.f32 %v2425_v11, %v1769_v29 }
 0x442   : > { %v2349_v32 = vpack.c.bf16 %v1770_v31, %v1768_v30 }
 0x444   : > { %2369 = vst [vmem:[%s3201_s23 + $0x20] sm:$0xff] %v2349_v32  }
 0x447   : > { %v1772_v33 = vpop.f32.mrf.mxu2 }
 0x448   : > { %v1773_v35 = vadd.f32 %v2425_v11, %v1772_v33 }
 0x44f   : > { %v1774_v42 = vpop.f32.mrf.mxu2 }
 0x450   : > { %v1775_v34 = vadd.f32 %v2425_v11, %v1774_v42 }
 0x452   : > { %v2354_v15 = vpack.c.bf16 %v1775_v34, %v1773_v35 }
 0x454   : > { %2370 = vst [vmem:[%s3201_s23 + $0x28] sm:$0xff] %v2354_v15  }
 0x457   : > { %v1777_v39 = vpop.f32.mrf.mxu2 }
 0x458   : > { %v1778_v37 = vadd.f32 %v2425_v11, %v1777_v39 }
 0x45f   : > { %v1779_v36 = vpop.f32.mrf.mxu2 }
 0x460   : > { %v1780_v16 = vadd.f32 %v2425_v11, %v1779_v36 }
 0x462   : > { %v2359_v38 = vpack.c.bf16 %v1780_v16, %v1778_v37 }
 0x464   : > { %2371 = vst [vmem:[%s3201_s23 + $0x30] sm:$0xff] %v2359_v38  }
 0x467   : > { %v1782_v40 = vpop.f32.mrf.mxu2 }
 0x468   : > { %v1783_v44 = vadd.f32 %v2425_v11, %v1782_v40 }
 0x46f   : > { %v1784_v41 = vpop.f32.mrf.mxu2 }
 0x470   : > { %v1785_v46 = vadd.f32 %v2425_v11, %v1784_v41 }
 0x472   : > { %v2364_v43 = vpack.c.bf16 %v1785_v46, %v1783_v44 }
 0x474   : > { %2372 = vst [vmem:[%s3201_s23 + $0x38] sm:$0xff] %v2364_v43  }
 0x475   : > { %2453 = shalt.err (!%p2450_p3)
}
 0x476   : > { %s2490_s0 = smov 64   ;;  %s2491_s23 = smov 4  }
 0x477   : > { %2381 = dma.vmem_to_hbm [thread:$0]  (%p2600_p5), %s1833_s27, 1024, %s1835_s30, %s1820_s17, %s2490_s0, %s2490_s0, %s2491_s23  }
 0x478 PF: > { %p2387_p4 = scmp.ge.s32.totalorder %s2488_s28, 2  ;;  %s1849_s15 = sand.u32 1, %s2476_s25  }
 0x479   : > { %s1850_s29 = scalar_lea.sflag [#allocation3], %s1849_s15 }
 0x47a   : > { %p2384_p7 = pnand %p2387_p4, %p2604_p6 }
 0x47c   : > { %p2385_p8 = pneg %p2384_p7 }
 0x47e   : > { %2471 = dma.done.wait (%p2385_p8), %s1850_s29, 1024  }
 0x47f   : > { %2473 = vsyncadd (%p2385_p8), %s1850_s29, 4294966272  ;;  %s3272_s28 = sld [smem:[#allocation6_spill]]  ;;  %s3275_s25 = smov %s2480_s26 }
 0x480   : > { %s3273_s16 = sld [smem:[#allocation5_spill]] }
 0x481   : > { %s3274_s27 = sld [smem:[#allocation7_spill]] }
 0x485   : > { %p23_p9 = scmp.ge.s32.totalorder %s3272_s28, 6  }
 0x486   : > { %s3276_s26 = smov %s3273_s16 }
 0x487   :  { %25 = sbr.rel (!%p23_p9) target bundleno = 5 (0x5), region = 107 }
 0x48c   :  { %1856 = vsyncpa [#allocation3], 1 }
 0x48d   :  { %1858 = vsyncpa [#allocation3 + $0x1], 1 }

</bundles_post_ra>
